<compile_context>
chip_gen: v5e
topology: v5e:2x2
jax: 0.10.0
libtpu: 0.0.40
codegen_flags: <defaults>
</compile_context>

<pallas_src>
import functools

import jax
import jax.numpy as jnp
import numpy as np
from jax import lax
from jax.experimental import pallas as pl
from jax.experimental.pallas import tpu as pltpu

LN_EPS = 1e-5  # PyTorch nn.LayerNorm default


def _layer_norm(z, gamma, beta):
    mu = jnp.mean(z, axis=-1, keepdims=True)
    var = jnp.mean(jnp.square(z - mu), axis=-1, keepdims=True)
    return (z - mu) * lax.rsqrt(var + LN_EPS) * gamma + beta


# -----------------------------------------------------------------------------
# Recurrent kernel: both directions fused as stacked rows, `tt` timesteps per
# grid step.  Grid axis 0 iterates sequentially over time blocks ("arbitrary").
# -----------------------------------------------------------------------------
def _lnlstm_kernel(gx_ref, wh_ref, cst_ref, out_ref, h_sc, c_sc, *, tt, unroll):
    @pl.when(pl.program_id(0) == 0)
    def _():
        h_sc[...] = jnp.zeros_like(h_sc)
        c_sc[...] = jnp.zeros_like(c_sc)

    R, H = h_sc.shape

    # Packed constants (8, 4H): row0=bh, row1=LNh gamma, row2=LNh beta,
    # row3[:H]=LNc gamma, row4[:H]=LNc beta (each starting at lane 0).
    bh = cst_ref[0:1, :]
    lnh_g = cst_ref[1:2, :]
    lnh_b = cst_ref[2:3, :]
    lnc_g = cst_ref[3:4, :H]
    lnc_b = cst_ref[4:5, :H]

    wh = wh_ref[...]            # (H, 4H), resident across the whole grid

    def step(s, carry):
        h, c = carry
        # gate pre-activations: precomputed LNx(Wx x_t) stream + LNh(Wh h_{t-1})
        gx = gx_ref[s].astype(jnp.float32)                      # (R, 4H)
        gh = jnp.dot(h.astype(wh.dtype), wh,
                     preferred_element_type=jnp.float32) + bh
        gates = gx + _layer_norm(gh, lnh_g, lnh_b)

        # sigmoid(x) = 0.5*(tanh(0.5*x)+1): one EUP op per gate element.
        if_sig = 0.5 * jnp.tanh(0.5 * gates[:, 0:2 * H]) + 0.5
        it = if_sig[:, :H]
        ft = if_sig[:, H:2 * H]
        gt = jnp.tanh(gates[:, 2 * H:3 * H])
        ot = 0.5 * jnp.tanh(0.5 * gates[:, 3 * H:4 * H]) + 0.5

        c_new = ft * c + it * gt
        h_new = ot * jnp.tanh(_layer_norm(c_new, lnc_g, lnc_b))

        out_ref[s] = h_new.astype(out_ref.dtype)
        return h_new, c_new

    h, c = lax.fori_loop(0, tt, step, (h_sc[...], c_sc[...]), unroll=unroll)
    h_sc[...] = h
    c_sc[...] = c


# -----------------------------------------------------------------------------
# Parameter handling
# -----------------------------------------------------------------------------
def init_params(key, input_size, hidden_size, bidirectional=True):
    """Deterministic parameter init matching the PyTorch module's shapes."""
    H = hidden_size // 2 if bidirectional else hidden_size
    G = 4 * H
    k_wx, k_bx, k_wh, k_bh = jax.random.split(key, 4)
    bx_bound = 1.0 / jnp.sqrt(jnp.float32(input_size))
    bh_bound = 1.0 / jnp.sqrt(jnp.float32(H))
    return {
        # nn.Linear weights are (out, in), stored in PyTorch layout here.
        "wx": jax.random.uniform(k_wx, (G, input_size), jnp.float32, -bx_bound, bx_bound),
        "bx": jax.random.uniform(k_bx, (G,), jnp.float32, -bx_bound, bx_bound),
        "wh": jax.random.uniform(k_wh, (G, H), jnp.float32, -bh_bound, bh_bound),
        "bh": jax.random.uniform(k_bh, (G,), jnp.float32, -bh_bound, bh_bound),
        # nn.LayerNorm defaults: weight = 1, bias = 0
        "lnx_g": jnp.ones((G,), jnp.float32), "lnx_b": jnp.zeros((G,), jnp.float32),
        "lnh_g": jnp.ones((G,), jnp.float32), "lnh_b": jnp.zeros((G,), jnp.float32),
        "lnc_g": jnp.ones((H,), jnp.float32), "lnc_b": jnp.zeros((H,), jnp.float32),
    }


def prepare_params(params):
    """One-time conversion of PyTorch-layout params into kernel-ready layout."""
    G = params["wx"].shape[0]
    H = params["wh"].shape[1]
    cst = jnp.zeros((8, G), jnp.float32)
    cst = cst.at[0].set(params["bh"])
    cst = cst.at[1].set(params["lnh_g"])
    cst = cst.at[2].set(params["lnh_b"])
    cst = cst.at[3, :H].set(params["lnc_g"])
    cst = cst.at[4, :H].set(params["lnc_b"])
    return {
        "wx_t": params["wx"].T.astype(jnp.float32),    # (D, 4H)
        "bx": params["bx"].astype(jnp.float32),
        "lnx_g": params["lnx_g"].astype(jnp.float32),
        "lnx_b": params["lnx_b"].astype(jnp.float32),
        "wh_t": params["wh"].T.astype(jnp.float32),    # (H, 4H)
        "consts": cst,                                 # packed bh / LNh / LNc
    }


def _derive_time_block(T, R, G, H, mxu_bytes, out_bytes):
    """Pick tt so double-buffered gate + output blocks fit a ~6 MiB budget."""
    per_step = 2 * R * (G * mxu_bytes + H * out_bytes)   # x2: double buffering
    budget = 6 * 1024 * 1024
    return int(max(1, min(T, 64, budget // max(per_step, 1))))


def _pick_unroll(tt):
    for u in (8, 4, 2, 1):
        if tt % u == 0:
            return u
    return 1


# -----------------------------------------------------------------------------
# Forward pass (matches LSTM.forward of the PyTorch module)
# -----------------------------------------------------------------------------
def ln_lstm_forward(x, prepared, bidirectional=True, time_block=None,
                    mxu_dtype=jnp.bfloat16, out_dtype=jnp.float32):
    """x: (B, T, input_size). Returns (output, None) like the PyTorch module."""
    B, T, D = x.shape
    H, G = prepared["wh_t"].shape
    ndir = 2 if bidirectional else 1

    # 1) x-path hoisted out of the recurrence: one big matmul + LNx
    #    (default MXU precision; "highest" emulation is unnecessary here).
    gx = jnp.einsum("btd,dg->tbg", x.astype(jnp.float32), prepared["wx_t"],
                    preferred_element_type=jnp.float32)
    gx = _layer_norm(gx + prepared["bx"], prepared["lnx_g"], prepared["lnx_b"])  # (T,B,G)

    # 2) sublane alignment: pad B so the packed row count ndir*Bp % 8 == 0.
    row_quant = 8 // ndir
    Bp = -(-B // row_quant) * row_quant
    if Bp != B:
        gx = jnp.pad(gx, ((0, 0), (0, Bp - B), (0, 0)))
    R = ndir * Bp

    # 3) time blocking from a VMEM budget; pad each direction's stream at the
    #    END of its processing order, so no per-step masking is needed (padded
    #    steps only corrupt the carry after the last real step, and their
    #    outputs are sliced off).
    if time_block is None:
        tt = _derive_time_block(T, R, G, H,
                                jnp.dtype(mxu_dtype).itemsize,
                                jnp.dtype(out_dtype).itemsize)
    else:
        tt = min(int(time_block), T)
    nb = -(-T // tt)
    tp = nb * tt

    streams = [gx]                       # forward: processes times 0..T-1
    if bidirectional:
        streams.append(gx[::-1])         # backward: processes times T-1..0
    packed = jnp.concatenate(streams, axis=1) if ndir == 2 else streams[0]
    if tp != T:
        packed = jnp.pad(packed, ((0, tp - T), (0, 0), (0, 0)))
    packed = packed.astype(mxu_dtype)                    # (tp, R, G) stream
    wh = prepared["wh_t"].astype(mxu_dtype)              # recurrent weight

    kernel = functools.partial(_lnlstm_kernel, tt=tt, unroll=_pick_unroll(tt))

    out = pl.pallas_call(
        kernel,
        out_shape=jax.ShapeDtypeStruct((tp, R, H), out_dtype),
        grid_spec=pltpu.PrefetchScalarGridSpec(
            num_scalar_prefetch=0,
            grid=(nb,),
            in_specs=[
                pl.BlockSpec((tt, R, G), lambda i: (i, 0, 0)),   # packed gate stream
                pl.BlockSpec((H, G), lambda i: (0, 0)),          # Wh (resident)
                pl.BlockSpec((8, G), lambda i: (0, 0)),          # packed consts
            ],
            out_specs=pl.BlockSpec((tt, R, H), lambda i: (i, 0, 0)),
            scratch_shapes=[
                pltpu.VMEM((R, H), jnp.float32),   # h carry (fwd rows ; bwd rows)
                pltpu.VMEM((R, H), jnp.float32),   # c carry
            ],
        ),
        compiler_params=pltpu.CompilerParams(
            dimension_semantics=("arbitrary",),    # sequential recurrence
            vmem_limit_bytes=32 * 1024 * 1024,
        ),
    )(packed, wh, prepared["consts"])

    out_f = jnp.transpose(out[:T, :B].astype(jnp.float32), (1, 0, 2))      # (B,T,H)
    if not bidirectional:
        return out_f, None
    # backward rows: packed position p holds hidden for time T-1-p
    out_b = jnp.transpose(out[:T, Bp:Bp + B][::-1].astype(jnp.float32), (1, 0, 2))
    return jnp.concatenate([out_f, out_b], axis=-1), None


# -----------------------------------------------------------------------------
# Pure-JAX reference (lax.scan mirror of the PyTorch module) for verification
# -----------------------------------------------------------------------------
def _reference_forward(x, params, bidirectional=True):
    x = x.astype(jnp.float32)
    B = x.shape[0]
    H = params["wh"].shape[1]

    def cell(carry, xt):
        h, c = carry
        gates = (_layer_norm(jnp.dot(xt, params["wx"].T) + params["bx"],
                             params["lnx_g"], params["lnx_b"]) +
                 _layer_norm(jnp.dot(h, params["wh"].T) + params["bh"],
                             params["lnh_g"], params["lnh_b"]))
        i, f, g, o = jnp.split(gates, 4, axis=-1)
        c = jax.nn.sigmoid(f) * c + jax.nn.sigmoid(i) * jnp.tanh(g)
        h = jax.nn.sigmoid(o) * jnp.tanh(
            _layer_norm(c, params["lnc_g"], params["lnc_b"]))
        return (h, c), h

    x_t = jnp.transpose(x, (1, 0, 2))
    init = (jnp.zeros((B, H), jnp.float32), jnp.zeros((B, H), jnp.float32))
    _, out_f = jax.lax.scan(cell, init, x_t)
    out = jnp.transpose(out_f, (1, 0, 2))
    if bidirectional:
        _, out_b = jax.lax.scan(cell, init, x_t[::-1])
        out = jnp.concatenate([out, jnp.transpose(out_b[::-1], (1, 0, 2))], axis=-1)
    return out


if __name__ == "__main__":
    batch, seq_len, input_size, hidden_size = 2, 8, 16, 32   # bidirectional -> H = 16
    key = jax.random.PRNGKey(0)
    k_x, k_p = jax.random.split(key)

    x = jax.random.normal(k_x, (batch, seq_len, input_size), jnp.float32)

    # --- bidirectional ---
    params = init_params(k_p, input_size, hidden_size, bidirectional=True)
    prepared = prepare_params(params)
    ref = _reference_forward(x, params, bidirectional=True)

    # full-f32 recurrent path (tight tolerance)
    fwd_f32 = jax.jit(functools.partial(ln_lstm_forward, bidirectional=True,
                                        mxu_dtype=jnp.float32))
    out_f32, _ = fwd_f32(x, prepared)
    jax.block_until_ready(out_f32)
    assert out_f32.shape == (batch, seq_len, hidden_size), out_f32.shape
    np.testing.assert_allclose(np.asarray(out_f32), np.asarray(ref),
                               rtol=2e-2, atol=2e-2)

    # default path: bf16-streamed gates / Wh (looser tolerance, documented)
    fwd = jax.jit(functools.partial(ln_lstm_forward, bidirectional=True))
    output, _ = fwd(x, prepared)
    jax.block_until_ready(output)
    assert output.shape == (batch, seq_len, hidden_size), output.shape
    np.testing.assert_allclose(np.asarray(output), np.asarray(ref),
                               rtol=5e-2, atol=5e-2)

    # --- unidirectional (dedicated single-stream variant) ---
    params_u = init_params(k_p, input_size, hidden_size, bidirectional=False)
    prepared_u = prepare_params(params_u)
    ref_u = _reference_forward(x, params_u, bidirectional=False)
    fwd_u = jax.jit(functools.partial(ln_lstm_forward, bidirectional=False,
                                      mxu_dtype=jnp.float32))
    out_u, _ = fwd_u(x, prepared_u)
    jax.block_until_ready(out_u)
    assert out_u.shape == (batch, seq_len, hidden_size), out_u.shape
    np.testing.assert_allclose(np.asarray(out_u), np.asarray(ref_u),
                               rtol=2e-2, atol=2e-2)

    print("KERNEL_OK")
</pallas_src>

<mosaic_0001>
module attributes {stable_mosaic.version = 11 : i64} {
  func.func @_lnlstm_kernel(%arg0: i32, %arg1: memref<8x8x64xf32, #tpu.memory_space<vmem>>, %arg2: memref<16x64xf32, #tpu.memory_space<vmem>>, %arg3: memref<8x64xf32, #tpu.memory_space<vmem>>, %arg4: memref<8x8x16xf32, #tpu.memory_space<vmem>>, %arg5: memref<8x16xf32, #tpu.memory_space<vmem>>, %arg6: memref<8x16xf32, #tpu.memory_space<vmem>>) attributes {dimension_semantics = [#tpu.dimension_semantics<arbitrary>], iteration_bounds = array<i64: 1>, scalar_prefetch = 0 : i64, scratch_operands = 2 : i64, tpu.core_type = #tpu.core_type<tc>, window_params = [{transform_indices = @transform_0, window_bounds = array<i64: 8, 8, 64>}, {pipeline_mode = #tpu.pipeline_mode<synchronous>, transform_indices = @transform_1, window_bounds = array<i64: 16, 64>}, {pipeline_mode = #tpu.pipeline_mode<synchronous>, transform_indices = @transform_2, window_bounds = array<i64: 8, 64>}, {transform_indices = @transform_3, window_bounds = array<i64: 8, 8, 16>}]} {
    %c0_i32 = arith.constant 0 : i32
    %0 = arith.cmpi eq, %arg0, %c0_i32 : i32
    %1 = arith.extui %0 : i1 to i32
    %c0_i32_0 = arith.constant 0 : i32
    %2 = arith.cmpi ne, %1, %c0_i32_0 : i32
    scf.if %2 {
      %cst_184 = arith.constant 0.000000e+00 : f32
      %653 = vector.broadcast %cst_184 : f32 to vector<8x16xf32>
      %c0_185 = arith.constant 0 : index
      %c0_186 = arith.constant 0 : index
      %654 = vector.load %arg5[%c0_185, %c0_186] : memref<8x16xf32, #tpu.memory_space<vmem>>, vector<8x16xf32>
      tpu.vector_store %arg5[%c0_185, %c0_186], %653 {strides = array<i32>} : memref<8x16xf32, #tpu.memory_space<vmem>>, vector<8x16xf32>,
      %cst_187 = arith.constant 0.000000e+00 : f32
      %655 = vector.broadcast %cst_187 : f32 to vector<8x16xf32>
      %c0_188 = arith.constant 0 : index
      %c0_189 = arith.constant 0 : index
      %656 = vector.load %arg6[%c0_188, %c0_189] : memref<8x16xf32, #tpu.memory_space<vmem>>, vector<8x16xf32>
      tpu.vector_store %arg6[%c0_188, %c0_189], %655 {strides = array<i32>} : memref<8x16xf32, #tpu.memory_space<vmem>>, vector<8x16xf32>,
    } else {
    }
    %c0 = arith.constant 0 : index
    %c0_1 = arith.constant 0 : index
    %3 = vector.load %arg3[%c0, %c0_1] : memref<8x64xf32, #tpu.memory_space<vmem>>, vector<1x64xf32>
    %c1 = arith.constant 1 : index
    %c0_2 = arith.constant 0 : index
    %4 = vector.load %arg3[%c1, %c0_2] : memref<8x64xf32, #tpu.memory_space<vmem>>, vector<1x64xf32>
    %c2 = arith.constant 2 : index
    %c0_3 = arith.constant 0 : index
    %5 = vector.load %arg3[%c2, %c0_3] : memref<8x64xf32, #tpu.memory_space<vmem>>, vector<1x64xf32>
    %c3 = arith.constant 3 : index
    %c0_4 = arith.constant 0 : index
    %6 = vector.load %arg3[%c3, %c0_4] : memref<8x64xf32, #tpu.memory_space<vmem>>, vector<1x16xf32>
    %c4 = arith.constant 4 : index
    %c0_5 = arith.constant 0 : index
    %7 = vector.load %arg3[%c4, %c0_5] : memref<8x64xf32, #tpu.memory_space<vmem>>, vector<1x16xf32>
    %c0_6 = arith.constant 0 : index
    %c0_7 = arith.constant 0 : index
    %8 = vector.load %arg2[%c0_6, %c0_7] : memref<16x64xf32, #tpu.memory_space<vmem>>, vector<16x64xf32>
    %c0_8 = arith.constant 0 : index
    %c0_9 = arith.constant 0 : index
    %9 = vector.load %arg5[%c0_8, %c0_9] : memref<8x16xf32, #tpu.memory_space<vmem>>, vector<8x16xf32>
    %c0_10 = arith.constant 0 : index
    %c0_11 = arith.constant 0 : index
    %10 = vector.load %arg6[%c0_10, %c0_11] : memref<8x16xf32, #tpu.memory_space<vmem>>, vector<8x16xf32>
    %c0_i32_12 = arith.constant 0 : i32
    %11 = arith.index_cast %c0_i32_12 : i32 to index
    %c0_13 = arith.constant 0 : index
    %c0_14 = arith.constant 0 : index
    %12 = vector.load %arg1[%11, %c0_13, %c0_14] : memref<8x8x64xf32, #tpu.memory_space<vmem>>, vector<1x8x64xf32>
    %13 = vector.shape_cast %12 : vector<1x8x64xf32> to vector<8x64xf32>
    %cst = arith.constant dense<0.000000e+00> : vector<8x64xf32>
    %14 = tpu.matmul %9, %8, %cst {dimension_numbers = #tpu.dot_dimension_numbers<[1], [0], [0], [1], [0, 0, 1, 1], [], []>} : vector<8x16xf32>, vector<16x64xf32>, vector<8x64xf32> -> vector<8x64xf32>
    %15 = vector.broadcast %3 : vector<1x64xf32> to vector<8x64xf32>
    %16 = arith.addf %14, %15 : vector<8x64xf32>
    %cst_15 = arith.constant dense<0.000000e+00> : vector<8xf32>
    %17 = vector.multi_reduction <add>, %16, %cst_15 [1] : vector<8x64xf32> to vector<8xf32>
    %18 = vector.shape_cast %17 : vector<8xf32> to vector<8x1xf32>
    %cst_16 = arith.constant 6.400000e+01 : f32
    %19 = vector.broadcast %cst_16 : f32 to vector<8x1xf32>
    %20 = arith.divf %18, %19 : vector<8x1xf32>
    %21 = vector.broadcast %20 : vector<8x1xf32> to vector<8x64xf32>
    %22 = arith.subf %16, %21 : vector<8x64xf32>
    %23 = arith.mulf %22, %22 : vector<8x64xf32>
    %cst_17 = arith.constant dense<0.000000e+00> : vector<8xf32>
    %24 = vector.multi_reduction <add>, %23, %cst_17 [1] : vector<8x64xf32> to vector<8xf32>
    %25 = vector.shape_cast %24 : vector<8xf32> to vector<8x1xf32>
    %cst_18 = arith.constant 6.400000e+01 : f32
    %26 = vector.broadcast %cst_18 : f32 to vector<8x1xf32>
    %27 = arith.divf %25, %26 : vector<8x1xf32>
    %28 = vector.broadcast %20 : vector<8x1xf32> to vector<8x64xf32>
    %29 = arith.subf %16, %28 : vector<8x64xf32>
    %cst_19 = arith.constant 9.99999974E-6 : f32
    %30 = vector.broadcast %cst_19 : f32 to vector<8x1xf32>
    %31 = arith.addf %27, %30 : vector<8x1xf32>
    %32 = math.rsqrt %31 : vector<8x1xf32>
    %33 = vector.broadcast %32 : vector<8x1xf32> to vector<8x64xf32>
    %34 = arith.mulf %29, %33 : vector<8x64xf32>
    %35 = vector.broadcast %4 : vector<1x64xf32> to vector<8x64xf32>
    %36 = arith.mulf %34, %35 : vector<8x64xf32>
    %37 = vector.broadcast %5 : vector<1x64xf32> to vector<8x64xf32>
    %38 = arith.addf %36, %37 : vector<8x64xf32>
    %39 = arith.addf %13, %38 : vector<8x64xf32>
    %40 = vector.extract_strided_slice %39 {offsets = [0, 0], sizes = [8, 32], strides = [1, 1]} : vector<8x64xf32> to vector<8x32xf32>
    %cst_20 = arith.constant 5.000000e-01 : f32
    %41 = vector.broadcast %cst_20 : f32 to vector<8x32xf32>
    %42 = arith.mulf %41, %40 : vector<8x32xf32>
    %43 = math.tanh %42 : vector<8x32xf32>
    %cst_21 = arith.constant 5.000000e-01 : f32
    %44 = vector.broadcast %cst_21 : f32 to vector<8x32xf32>
    %45 = arith.mulf %44, %43 : vector<8x32xf32>
    %cst_22 = arith.constant 5.000000e-01 : f32
    %46 = vector.broadcast %cst_22 : f32 to vector<8x32xf32>
    %47 = arith.addf %45, %46 : vector<8x32xf32>
    %48 = vector.extract_strided_slice %47 {offsets = [0, 0], sizes = [8, 16], strides = [1, 1]} : vector<8x32xf32> to vector<8x16xf32>
    %49 = vector.extract_strided_slice %47 {offsets = [0, 16], sizes = [8, 16], strides = [1, 1]} : vector<8x32xf32> to vector<8x16xf32>
    %50 = vector.extract_strided_slice %39 {offsets = [0, 32], sizes = [8, 16], strides = [1, 1]} : vector<8x64xf32> to vector<8x16xf32>
    %51 = math.tanh %50 : vector<8x16xf32>
    %52 = vector.extract_strided_slice %39 {offsets = [0, 48], sizes = [8, 16], strides = [1, 1]} : vector<8x64xf32> to vector<8x16xf32>
    %cst_23 = arith.constant 5.000000e-01 : f32
    %53 = vector.broadcast %cst_23 : f32 to vector<8x16xf32>
    %54 = arith.mulf %53, %52 : vector<8x16xf32>
    %55 = math.tanh %54 : vector<8x16xf32>
    %cst_24 = arith.constant 5.000000e-01 : f32
    %56 = vector.broadcast %cst_24 : f32 to vector<8x16xf32>
    %57 = arith.mulf %56, %55 : vector<8x16xf32>
    %cst_25 = arith.constant 5.000000e-01 : f32
    %58 = vector.broadcast %cst_25 : f32 to vector<8x16xf32>
    %59 = arith.addf %57, %58 : vector<8x16xf32>
    %60 = arith.mulf %49, %10 : vector<8x16xf32>
    %61 = arith.mulf %48, %51 : vector<8x16xf32>
    %62 = arith.addf %60, %61 : vector<8x16xf32>
    %cst_26 = arith.constant dense<0.000000e+00> : vector<8xf32>
    %63 = vector.multi_reduction <add>, %62, %cst_26 [1] : vector<8x16xf32> to vector<8xf32>
    %64 = vector.shape_cast %63 : vector<8xf32> to vector<8x1xf32>
    %cst_27 = arith.constant 1.600000e+01 : f32
    %65 = vector.broadcast %cst_27 : f32 to vector<8x1xf32>
    %66 = arith.divf %64, %65 : vector<8x1xf32>
    %67 = vector.broadcast %66 : vector<8x1xf32> to vector<8x16xf32>
    %68 = arith.subf %62, %67 : vector<8x16xf32>
    %69 = arith.mulf %68, %68 : vector<8x16xf32>
    %cst_28 = arith.constant dense<0.000000e+00> : vector<8xf32>
    %70 = vector.multi_reduction <add>, %69, %cst_28 [1] : vector<8x16xf32> to vector<8xf32>
    %71 = vector.shape_cast %70 : vector<8xf32> to vector<8x1xf32>
    %cst_29 = arith.constant 1.600000e+01 : f32
    %72 = vector.broadcast %cst_29 : f32 to vector<8x1xf32>
    %73 = arith.divf %71, %72 : vector<8x1xf32>
    %74 = vector.broadcast %66 : vector<8x1xf32> to vector<8x16xf32>
    %75 = arith.subf %62, %74 : vector<8x16xf32>
    %cst_30 = arith.constant 9.99999974E-6 : f32
    %76 = vector.broadcast %cst_30 : f32 to vector<8x1xf32>
    %77 = arith.addf %73, %76 : vector<8x1xf32>
    %78 = math.rsqrt %77 : vector<8x1xf32>
    %79 = vector.broadcast %78 : vector<8x1xf32> to vector<8x16xf32>
    %80 = arith.mulf %75, %79 : vector<8x16xf32>
    %81 = vector.broadcast %6 : vector<1x16xf32> to vector<8x16xf32>
    %82 = arith.mulf %80, %81 : vector<8x16xf32>
    %83 = vector.broadcast %7 : vector<1x16xf32> to vector<8x16xf32>
    %84 = arith.addf %82, %83 : vector<8x16xf32>
    %85 = math.tanh %84 : vector<8x16xf32>
    %86 = arith.mulf %59, %85 : vector<8x16xf32>
    %87 = arith.index_cast %c0_i32_12 : i32 to index
    %c0_31 = arith.constant 0 : index
    %c0_32 = arith.constant 0 : index
    %88 = vector.load %arg4[%87, %c0_31, %c0_32] : memref<8x8x16xf32, #tpu.memory_space<vmem>>, vector<1x8x16xf32>
    %89 = vector.shape_cast %88 : vector<1x8x16xf32> to vector<8x16xf32>
    %90 = vector.shape_cast %86 : vector<8x16xf32> to vector<1x8x16xf32>
    tpu.vector_store %arg4[%87, %c0_31, %c0_32], %90 {strides = array<i32>} : memref<8x8x16xf32, #tpu.memory_space<vmem>>, vector<1x8x16xf32>,
    %c1_i32 = arith.constant 1 : i32
    %91 = arith.index_cast %c1_i32 : i32 to index
    %c0_33 = arith.constant 0 : index
    %c0_34 = arith.constant 0 : index
    %92 = vector.load %arg1[%91, %c0_33, %c0_34] : memref<8x8x64xf32, #tpu.memory_space<vmem>>, vector<1x8x64xf32>
    %93 = vector.shape_cast %92 : vector<1x8x64xf32> to vector<8x64xf32>
    %cst_35 = arith.constant dense<0.000000e+00> : vector<8x64xf32>
    %94 = tpu.matmul %86, %8, %cst_35 {dimension_numbers = #tpu.dot_dimension_numbers<[1], [0], [0], [1], [0, 0, 1, 1], [], []>} : vector<8x16xf32>, vector<16x64xf32>, vector<8x64xf32> -> vector<8x64xf32>
    %95 = vector.broadcast %3 : vector<1x64xf32> to vector<8x64xf32>
    %96 = arith.addf %94, %95 : vector<8x64xf32>
    %cst_36 = arith.constant dense<0.000000e+00> : vector<8xf32>
    %97 = vector.multi_reduction <add>, %96, %cst_36 [1] : vector<8x64xf32> to vector<8xf32>
    %98 = vector.shape_cast %97 : vector<8xf32> to vector<8x1xf32>
    %cst_37 = arith.constant 6.400000e+01 : f32
    %99 = vector.broadcast %cst_37 : f32 to vector<8x1xf32>
    %100 = arith.divf %98, %99 : vector<8x1xf32>
    %101 = vector.broadcast %100 : vector<8x1xf32> to vector<8x64xf32>
    %102 = arith.subf %96, %101 : vector<8x64xf32>
    %103 = arith.mulf %102, %102 : vector<8x64xf32>
    %cst_38 = arith.constant dense<0.000000e+00> : vector<8xf32>
    %104 = vector.multi_reduction <add>, %103, %cst_38 [1] : vector<8x64xf32> to vector<8xf32>
    %105 = vector.shape_cast %104 : vector<8xf32> to vector<8x1xf32>
    %cst_39 = arith.constant 6.400000e+01 : f32
    %106 = vector.broadcast %cst_39 : f32 to vector<8x1xf32>
    %107 = arith.divf %105, %106 : vector<8x1xf32>
    %108 = vector.broadcast %100 : vector<8x1xf32> to vector<8x64xf32>
    %109 = arith.subf %96, %108 : vector<8x64xf32>
    %cst_40 = arith.constant 9.99999974E-6 : f32
    %110 = vector.broadcast %cst_40 : f32 to vector<8x1xf32>
    %111 = arith.addf %107, %110 : vector<8x1xf32>
    %112 = math.rsqrt %111 : vector<8x1xf32>
    %113 = vector.broadcast %112 : vector<8x1xf32> to vector<8x64xf32>
    %114 = arith.mulf %109, %113 : vector<8x64xf32>
    %115 = vector.broadcast %4 : vector<1x64xf32> to vector<8x64xf32>
    %116 = arith.mulf %114, %115 : vector<8x64xf32>
    %117 = vector.broadcast %5 : vector<1x64xf32> to vector<8x64xf32>
    %118 = arith.addf %116, %117 : vector<8x64xf32>
    %119 = arith.addf %93, %118 : vector<8x64xf32>
    %120 = vector.extract_strided_slice %119 {offsets = [0, 0], sizes = [8, 32], strides = [1, 1]} : vector<8x64xf32> to vector<8x32xf32>
    %cst_41 = arith.constant 5.000000e-01 : f32
    %121 = vector.broadcast %cst_41 : f32 to vector<8x32xf32>
    %122 = arith.mulf %121, %120 : vector<8x32xf32>
    %123 = math.tanh %122 : vector<8x32xf32>
    %cst_42 = arith.constant 5.000000e-01 : f32
    %124 = vector.broadcast %cst_42 : f32 to vector<8x32xf32>
    %125 = arith.mulf %124, %123 : vector<8x32xf32>
    %cst_43 = arith.constant 5.000000e-01 : f32
    %126 = vector.broadcast %cst_43 : f32 to vector<8x32xf32>
    %127 = arith.addf %125, %126 : vector<8x32xf32>
    %128 = vector.extract_strided_slice %127 {offsets = [0, 0], sizes = [8, 16], strides = [1, 1]} : vector<8x32xf32> to vector<8x16xf32>
    %129 = vector.extract_strided_slice %127 {offsets = [0, 16], sizes = [8, 16], strides = [1, 1]} : vector<8x32xf32> to vector<8x16xf32>
    %130 = vector.extract_strided_slice %119 {offsets = [0, 32], sizes = [8, 16], strides = [1, 1]} : vector<8x64xf32> to vector<8x16xf32>
    %131 = math.tanh %130 : vector<8x16xf32>
    %132 = vector.extract_strided_slice %119 {offsets = [0, 48], sizes = [8, 16], strides = [1, 1]} : vector<8x64xf32> to vector<8x16xf32>
    %cst_44 = arith.constant 5.000000e-01 : f32
    %133 = vector.broadcast %cst_44 : f32 to vector<8x16xf32>
    %134 = arith.mulf %133, %132 : vector<8x16xf32>
    %135 = math.tanh %134 : vector<8x16xf32>
    %cst_45 = arith.constant 5.000000e-01 : f32
    %136 = vector.broadcast %cst_45 : f32 to vector<8x16xf32>
    %137 = arith.mulf %136, %135 : vector<8x16xf32>
    %cst_46 = arith.constant 5.000000e-01 : f32
    %138 = vector.broadcast %cst_46 : f32 to vector<8x16xf32>
    %139 = arith.addf %137, %138 : vector<8x16xf32>
    %140 = arith.mulf %129, %62 : vector<8x16xf32>
    %141 = arith.mulf %128, %131 : vector<8x16xf32>
    %142 = arith.addf %140, %141 : vector<8x16xf32>
    %cst_47 = arith.constant dense<0.000000e+00> : vector<8xf32>
    %143 = vector.multi_reduction <add>, %142, %cst_47 [1] : vector<8x16xf32> to vector<8xf32>
    %144 = vector.shape_cast %143 : vector<8xf32> to vector<8x1xf32>
    %cst_48 = arith.constant 1.600000e+01 : f32
    %145 = vector.broadcast %cst_48 : f32 to vector<8x1xf32>
    %146 = arith.divf %144, %145 : vector<8x1xf32>
    %147 = vector.broadcast %146 : vector<8x1xf32> to vector<8x16xf32>
    %148 = arith.subf %142, %147 : vector<8x16xf32>
    %149 = arith.mulf %148, %148 : vector<8x16xf32>
    %cst_49 = arith.constant dense<0.000000e+00> : vector<8xf32>
    %150 = vector.multi_reduction <add>, %149, %cst_49 [1] : vector<8x16xf32> to vector<8xf32>
    %151 = vector.shape_cast %150 : vector<8xf32> to vector<8x1xf32>
    %cst_50 = arith.constant 1.600000e+01 : f32
    %152 = vector.broadcast %cst_50 : f32 to vector<8x1xf32>
    %153 = arith.divf %151, %152 : vector<8x1xf32>
    %154 = vector.broadcast %146 : vector<8x1xf32> to vector<8x16xf32>
    %155 = arith.subf %142, %154 : vector<8x16xf32>
    %cst_51 = arith.constant 9.99999974E-6 : f32
    %156 = vector.broadcast %cst_51 : f32 to vector<8x1xf32>
    %157 = arith.addf %153, %156 : vector<8x1xf32>
    %158 = math.rsqrt %157 : vector<8x1xf32>
    %159 = vector.broadcast %158 : vector<8x1xf32> to vector<8x16xf32>
    %160 = arith.mulf %155, %159 : vector<8x16xf32>
    %161 = vector.broadcast %6 : vector<1x16xf32> to vector<8x16xf32>
    %162 = arith.mulf %160, %161 : vector<8x16xf32>
    %163 = vector.broadcast %7 : vector<1x16xf32> to vector<8x16xf32>
    %164 = arith.addf %162, %163 : vector<8x16xf32>
    %165 = math.tanh %164 : vector<8x16xf32>
    %166 = arith.mulf %139, %165 : vector<8x16xf32>
    %167 = arith.index_cast %c1_i32 : i32 to index
    %c0_52 = arith.constant 0 : index
    %c0_53 = arith.constant 0 : index
    %168 = vector.load %arg4[%167, %c0_52, %c0_53] : memref<8x8x16xf32, #tpu.memory_space<vmem>>, vector<1x8x16xf32>
    %169 = vector.shape_cast %168 : vector<1x8x16xf32> to vector<8x16xf32>
    %170 = vector.shape_cast %166 : vector<8x16xf32> to vector<1x8x16xf32>
    tpu.vector_store %arg4[%167, %c0_52, %c0_53], %170 {strides = array<i32>} : memref<8x8x16xf32, #tpu.memory_space<vmem>>, vector<1x8x16xf32>,
    %c2_i32 = arith.constant 2 : i32
    %171 = arith.index_cast %c2_i32 : i32 to index
    %c0_54 = arith.constant 0 : index
    %c0_55 = arith.constant 0 : index
    %172 = vector.load %arg1[%171, %c0_54, %c0_55] : memref<8x8x64xf32, #tpu.memory_space<vmem>>, vector<1x8x64xf32>
    %173 = vector.shape_cast %172 : vector<1x8x64xf32> to vector<8x64xf32>
    %cst_56 = arith.constant dense<0.000000e+00> : vector<8x64xf32>
    %174 = tpu.matmul %166, %8, %cst_56 {dimension_numbers = #tpu.dot_dimension_numbers<[1], [0], [0], [1], [0, 0, 1, 1], [], []>} : vector<8x16xf32>, vector<16x64xf32>, vector<8x64xf32> -> vector<8x64xf32>
    %175 = vector.broadcast %3 : vector<1x64xf32> to vector<8x64xf32>
    %176 = arith.addf %174, %175 : vector<8x64xf32>
    %cst_57 = arith.constant dense<0.000000e+00> : vector<8xf32>
    %177 = vector.multi_reduction <add>, %176, %cst_57 [1] : vector<8x64xf32> to vector<8xf32>
    %178 = vector.shape_cast %177 : vector<8xf32> to vector<8x1xf32>
    %cst_58 = arith.constant 6.400000e+01 : f32
    %179 = vector.broadcast %cst_58 : f32 to vector<8x1xf32>
    %180 = arith.divf %178, %179 : vector<8x1xf32>
    %181 = vector.broadcast %180 : vector<8x1xf32> to vector<8x64xf32>
    %182 = arith.subf %176, %181 : vector<8x64xf32>
    %183 = arith.mulf %182, %182 : vector<8x64xf32>
    %cst_59 = arith.constant dense<0.000000e+00> : vector<8xf32>
    %184 = vector.multi_reduction <add>, %183, %cst_59 [1] : vector<8x64xf32> to vector<8xf32>
    %185 = vector.shape_cast %184 : vector<8xf32> to vector<8x1xf32>
    %cst_60 = arith.constant 6.400000e+01 : f32
    %186 = vector.broadcast %cst_60 : f32 to vector<8x1xf32>
    %187 = arith.divf %185, %186 : vector<8x1xf32>
    %188 = vector.broadcast %180 : vector<8x1xf32> to vector<8x64xf32>
    %189 = arith.subf %176, %188 : vector<8x64xf32>
    %cst_61 = arith.constant 9.99999974E-6 : f32
    %190 = vector.broadcast %cst_61 : f32 to vector<8x1xf32>
    %191 = arith.addf %187, %190 : vector<8x1xf32>
    %192 = math.rsqrt %191 : vector<8x1xf32>
    %193 = vector.broadcast %192 : vector<8x1xf32> to vector<8x64xf32>
    %194 = arith.mulf %189, %193 : vector<8x64xf32>
    %195 = vector.broadcast %4 : vector<1x64xf32> to vector<8x64xf32>
    %196 = arith.mulf %194, %195 : vector<8x64xf32>
    %197 = vector.broadcast %5 : vector<1x64xf32> to vector<8x64xf32>
    %198 = arith.addf %196, %197 : vector<8x64xf32>
    %199 = arith.addf %173, %198 : vector<8x64xf32>
    %200 = vector.extract_strided_slice %199 {offsets = [0, 0], sizes = [8, 32], strides = [1, 1]} : vector<8x64xf32> to vector<8x32xf32>
    %cst_62 = arith.constant 5.000000e-01 : f32
    %201 = vector.broadcast %cst_62 : f32 to vector<8x32xf32>
    %202 = arith.mulf %201, %200 : vector<8x32xf32>
    %203 = math.tanh %202 : vector<8x32xf32>
    %cst_63 = arith.constant 5.000000e-01 : f32
    %204 = vector.broadcast %cst_63 : f32 to vector<8x32xf32>
    %205 = arith.mulf %204, %203 : vector<8x32xf32>
    %cst_64 = arith.constant 5.000000e-01 : f32
    %206 = vector.broadcast %cst_64 : f32 to vector<8x32xf32>
    %207 = arith.addf %205, %206 : vector<8x32xf32>
    %208 = vector.extract_strided_slice %207 {offsets = [0, 0], sizes = [8, 16], strides = [1, 1]} : vector<8x32xf32> to vector<8x16xf32>
    %209 = vector.extract_strided_slice %207 {offsets = [0, 16], sizes = [8, 16], strides = [1, 1]} : vector<8x32xf32> to vector<8x16xf32>
    %210 = vector.extract_strided_slice %199 {offsets = [0, 32], sizes = [8, 16], strides = [1, 1]} : vector<8x64xf32> to vector<8x16xf32>
    %211 = math.tanh %210 : vector<8x16xf32>
    %212 = vector.extract_strided_slice %199 {offsets = [0, 48], sizes = [8, 16], strides = [1, 1]} : vector<8x64xf32> to vector<8x16xf32>
    %cst_65 = arith.constant 5.000000e-01 : f32
    %213 = vector.broadcast %cst_65 : f32 to vector<8x16xf32>
    %214 = arith.mulf %213, %212 : vector<8x16xf32>
    %215 = math.tanh %214 : vector<8x16xf32>
    %cst_66 = arith.constant 5.000000e-01 : f32
    %216 = vector.broadcast %cst_66 : f32 to vector<8x16xf32>
    %217 = arith.mulf %216, %215 : vector<8x16xf32>
    %cst_67 = arith.constant 5.000000e-01 : f32
    %218 = vector.broadcast %cst_67 : f32 to vector<8x16xf32>
    %219 = arith.addf %217, %218 : vector<8x16xf32>
    %220 = arith.mulf %209, %142 : vector<8x16xf32>
    %221 = arith.mulf %208, %211 : vector<8x16xf32>
    %222 = arith.addf %220, %221 : vector<8x16xf32>
    %cst_68 = arith.constant dense<0.000000e+00> : vector<8xf32>
    %223 = vector.multi_reduction <add>, %222, %cst_68 [1] : vector<8x16xf32> to vector<8xf32>
    %224 = vector.shape_cast %223 : vector<8xf32> to vector<8x1xf32>
    %cst_69 = arith.constant 1.600000e+01 : f32
    %225 = vector.broadcast %cst_69 : f32 to vector<8x1xf32>
    %226 = arith.divf %224, %225 : vector<8x1xf32>
    %227 = vector.broadcast %226 : vector<8x1xf32> to vector<8x16xf32>
    %228 = arith.subf %222, %227 : vector<8x16xf32>
    %229 = arith.mulf %228, %228 : vector<8x16xf32>
    %cst_70 = arith.constant dense<0.000000e+00> : vector<8xf32>
    %230 = vector.multi_reduction <add>, %229, %cst_70 [1] : vector<8x16xf32> to vector<8xf32>
    %231 = vector.shape_cast %230 : vector<8xf32> to vector<8x1xf32>
    %cst_71 = arith.constant 1.600000e+01 : f32
    %232 = vector.broadcast %cst_71 : f32 to vector<8x1xf32>
    %233 = arith.divf %231, %232 : vector<8x1xf32>
    %234 = vector.broadcast %226 : vector<8x1xf32> to vector<8x16xf32>
    %235 = arith.subf %222, %234 : vector<8x16xf32>
    %cst_72 = arith.constant 9.99999974E-6 : f32
    %236 = vector.broadcast %cst_72 : f32 to vector<8x1xf32>
    %237 = arith.addf %233, %236 : vector<8x1xf32>
    %238 = math.rsqrt %237 : vector<8x1xf32>
    %239 = vector.broadcast %238 : vector<8x1xf32> to vector<8x16xf32>
    %240 = arith.mulf %235, %239 : vector<8x16xf32>
    %241 = vector.broadcast %6 : vector<1x16xf32> to vector<8x16xf32>
    %242 = arith.mulf %240, %241 : vector<8x16xf32>
    %243 = vector.broadcast %7 : vector<1x16xf32> to vector<8x16xf32>
    %244 = arith.addf %242, %243 : vector<8x16xf32>
    %245 = math.tanh %244 : vector<8x16xf32>
    %246 = arith.mulf %219, %245 : vector<8x16xf32>
    %247 = arith.index_cast %c2_i32 : i32 to index
    %c0_73 = arith.constant 0 : index
    %c0_74 = arith.constant 0 : index
    %248 = vector.load %arg4[%247, %c0_73, %c0_74] : memref<8x8x16xf32, #tpu.memory_space<vmem>>, vector<1x8x16xf32>
    %249 = vector.shape_cast %248 : vector<1x8x16xf32> to vector<8x16xf32>
    %250 = vector.shape_cast %246 : vector<8x16xf32> to vector<1x8x16xf32>
    tpu.vector_store %arg4[%247, %c0_73, %c0_74], %250 {strides = array<i32>} : memref<8x8x16xf32, #tpu.memory_space<vmem>>, vector<1x8x16xf32>,
    %c3_i32 = arith.constant 3 : i32
    %251 = arith.index_cast %c3_i32 : i32 to index
    %c0_75 = arith.constant 0 : index
    %c0_76 = arith.constant 0 : index
    %252 = vector.load %arg1[%251, %c0_75, %c0_76] : memref<8x8x64xf32, #tpu.memory_space<vmem>>, vector<1x8x64xf32>
    %253 = vector.shape_cast %252 : vector<1x8x64xf32> to vector<8x64xf32>
    %cst_77 = arith.constant dense<0.000000e+00> : vector<8x64xf32>
    %254 = tpu.matmul %246, %8, %cst_77 {dimension_numbers = #tpu.dot_dimension_numbers<[1], [0], [0], [1], [0, 0, 1, 1], [], []>} : vector<8x16xf32>, vector<16x64xf32>, vector<8x64xf32> -> vector<8x64xf32>
    %255 = vector.broadcast %3 : vector<1x64xf32> to vector<8x64xf32>
    %256 = arith.addf %254, %255 : vector<8x64xf32>
    %cst_78 = arith.constant dense<0.000000e+00> : vector<8xf32>
    %257 = vector.multi_reduction <add>, %256, %cst_78 [1] : vector<8x64xf32> to vector<8xf32>
    %258 = vector.shape_cast %257 : vector<8xf32> to vector<8x1xf32>
    %cst_79 = arith.constant 6.400000e+01 : f32
    %259 = vector.broadcast %cst_79 : f32 to vector<8x1xf32>
    %260 = arith.divf %258, %259 : vector<8x1xf32>
    %261 = vector.broadcast %260 : vector<8x1xf32> to vector<8x64xf32>
    %262 = arith.subf %256, %261 : vector<8x64xf32>
    %263 = arith.mulf %262, %262 : vector<8x64xf32>
    %cst_80 = arith.constant dense<0.000000e+00> : vector<8xf32>
    %264 = vector.multi_reduction <add>, %263, %cst_80 [1] : vector<8x64xf32> to vector<8xf32>
    %265 = vector.shape_cast %264 : vector<8xf32> to vector<8x1xf32>
    %cst_81 = arith.constant 6.400000e+01 : f32
    %266 = vector.broadcast %cst_81 : f32 to vector<8x1xf32>
    %267 = arith.divf %265, %266 : vector<8x1xf32>
    %268 = vector.broadcast %260 : vector<8x1xf32> to vector<8x64xf32>
    %269 = arith.subf %256, %268 : vector<8x64xf32>
    %cst_82 = arith.constant 9.99999974E-6 : f32
    %270 = vector.broadcast %cst_82 : f32 to vector<8x1xf32>
    %271 = arith.addf %267, %270 : vector<8x1xf32>
    %272 = math.rsqrt %271 : vector<8x1xf32>
    %273 = vector.broadcast %272 : vector<8x1xf32> to vector<8x64xf32>
    %274 = arith.mulf %269, %273 : vector<8x64xf32>
    %275 = vector.broadcast %4 : vector<1x64xf32> to vector<8x64xf32>
    %276 = arith.mulf %274, %275 : vector<8x64xf32>
    %277 = vector.broadcast %5 : vector<1x64xf32> to vector<8x64xf32>
    %278 = arith.addf %276, %277 : vector<8x64xf32>
    %279 = arith.addf %253, %278 : vector<8x64xf32>
    %280 = vector.extract_strided_slice %279 {offsets = [0, 0], sizes = [8, 32], strides = [1, 1]} : vector<8x64xf32> to vector<8x32xf32>
    %cst_83 = arith.constant 5.000000e-01 : f32
    %281 = vector.broadcast %cst_83 : f32 to vector<8x32xf32>
    %282 = arith.mulf %281, %280 : vector<8x32xf32>
    %283 = math.tanh %282 : vector<8x32xf32>
    %cst_84 = arith.constant 5.000000e-01 : f32
    %284 = vector.broadcast %cst_84 : f32 to vector<8x32xf32>
    %285 = arith.mulf %284, %283 : vector<8x32xf32>
    %cst_85 = arith.constant 5.000000e-01 : f32
    %286 = vector.broadcast %cst_85 : f32 to vector<8x32xf32>
    %287 = arith.addf %285, %286 : vector<8x32xf32>
    %288 = vector.extract_strided_slice %287 {offsets = [0, 0], sizes = [8, 16], strides = [1, 1]} : vector<8x32xf32> to vector<8x16xf32>
    %289 = vector.extract_strided_slice %287 {offsets = [0, 16], sizes = [8, 16], strides = [1, 1]} : vector<8x32xf32> to vector<8x16xf32>
    %290 = vector.extract_strided_slice %279 {offsets = [0, 32], sizes = [8, 16], strides = [1, 1]} : vector<8x64xf32> to vector<8x16xf32>
    %291 = math.tanh %290 : vector<8x16xf32>
    %292 = vector.extract_strided_slice %279 {offsets = [0, 48], sizes = [8, 16], strides = [1, 1]} : vector<8x64xf32> to vector<8x16xf32>
    %cst_86 = arith.constant 5.000000e-01 : f32
    %293 = vector.broadcast %cst_86 : f32 to vector<8x16xf32>
    %294 = arith.mulf %293, %292 : vector<8x16xf32>
    %295 = math.tanh %294 : vector<8x16xf32>
    %cst_87 = arith.constant 5.000000e-01 : f32
    %296 = vector.broadcast %cst_87 : f32 to vector<8x16xf32>
    %297 = arith.mulf %296, %295 : vector<8x16xf32>
    %cst_88 = arith.constant 5.000000e-01 : f32
    %298 = vector.broadcast %cst_88 : f32 to vector<8x16xf32>
    %299 = arith.addf %297, %298 : vector<8x16xf32>
    %300 = arith.mulf %289, %222 : vector<8x16xf32>
    %301 = arith.mulf %288, %291 : vector<8x16xf32>
    %302 = arith.addf %300, %301 : vector<8x16xf32>
    %cst_89 = arith.constant dense<0.000000e+00> : vector<8xf32>
    %303 = vector.multi_reduction <add>, %302, %cst_89 [1] : vector<8x16xf32> to vector<8xf32>
    %304 = vector.shape_cast %303 : vector<8xf32> to vector<8x1xf32>
    %cst_90 = arith.constant 1.600000e+01 : f32
    %305 = vector.broadcast %cst_90 : f32 to vector<8x1xf32>
    %306 = arith.divf %304, %305 : vector<8x1xf32>
    %307 = vector.broadcast %306 : vector<8x1xf32> to vector<8x16xf32>
    %308 = arith.subf %302, %307 : vector<8x16xf32>
    %309 = arith.mulf %308, %308 : vector<8x16xf32>
    %cst_91 = arith.constant dense<0.000000e+00> : vector<8xf32>
    %310 = vector.multi_reduction <add>, %309, %cst_91 [1] : vector<8x16xf32> to vector<8xf32>
    %311 = vector.shape_cast %310 : vector<8xf32> to vector<8x1xf32>
    %cst_92 = arith.constant 1.600000e+01 : f32
    %312 = vector.broadcast %cst_92 : f32 to vector<8x1xf32>
    %313 = arith.divf %311, %312 : vector<8x1xf32>
    %314 = vector.broadcast %306 : vector<8x1xf32> to vector<8x16xf32>
    %315 = arith.subf %302, %314 : vector<8x16xf32>
    %cst_93 = arith.constant 9.99999974E-6 : f32
    %316 = vector.broadcast %cst_93 : f32 to vector<8x1xf32>
    %317 = arith.addf %313, %316 : vector<8x1xf32>
    %318 = math.rsqrt %317 : vector<8x1xf32>
    %319 = vector.broadcast %318 : vector<8x1xf32> to vector<8x16xf32>
    %320 = arith.mulf %315, %319 : vector<8x16xf32>
    %321 = vector.broadcast %6 : vector<1x16xf32> to vector<8x16xf32>
    %322 = arith.mulf %320, %321 : vector<8x16xf32>
    %323 = vector.broadcast %7 : vector<1x16xf32> to vector<8x16xf32>
    %324 = arith.addf %322, %323 : vector<8x16xf32>
    %325 = math.tanh %324 : vector<8x16xf32>
    %326 = arith.mulf %299, %325 : vector<8x16xf32>
    %327 = arith.index_cast %c3_i32 : i32 to index
    %c0_94 = arith.constant 0 : index
    %c0_95 = arith.constant 0 : index
    %328 = vector.load %arg4[%327, %c0_94, %c0_95] : memref<8x8x16xf32, #tpu.memory_space<vmem>>, vector<1x8x16xf32>
    %329 = vector.shape_cast %328 : vector<1x8x16xf32> to vector<8x16xf32>
    %330 = vector.shape_cast %326 : vector<8x16xf32> to vector<1x8x16xf32>
    tpu.vector_store %arg4[%327, %c0_94, %c0_95], %330 {strides = array<i32>} : memref<8x8x16xf32, #tpu.memory_space<vmem>>, vector<1x8x16xf32>,
    %c4_i32 = arith.constant 4 : i32
    %331 = arith.index_cast %c4_i32 : i32 to index
    %c0_96 = arith.constant 0 : index
    %c0_97 = arith.constant 0 : index
    %332 = vector.load %arg1[%331, %c0_96, %c0_97] : memref<8x8x64xf32, #tpu.memory_space<vmem>>, vector<1x8x64xf32>
    %333 = vector.shape_cast %332 : vector<1x8x64xf32> to vector<8x64xf32>
    %cst_98 = arith.constant dense<0.000000e+00> : vector<8x64xf32>
    %334 = tpu.matmul %326, %8, %cst_98 {dimension_numbers = #tpu.dot_dimension_numbers<[1], [0], [0], [1], [0, 0, 1, 1], [], []>} : vector<8x16xf32>, vector<16x64xf32>, vector<8x64xf32> -> vector<8x64xf32>
    %335 = vector.broadcast %3 : vector<1x64xf32> to vector<8x64xf32>
    %336 = arith.addf %334, %335 : vector<8x64xf32>
    %cst_99 = arith.constant dense<0.000000e+00> : vector<8xf32>
    %337 = vector.multi_reduction <add>, %336, %cst_99 [1] : vector<8x64xf32> to vector<8xf32>
    %338 = vector.shape_cast %337 : vector<8xf32> to vector<8x1xf32>
    %cst_100 = arith.constant 6.400000e+01 : f32
    %339 = vector.broadcast %cst_100 : f32 to vector<8x1xf32>
    %340 = arith.divf %338, %339 : vector<8x1xf32>
    %341 = vector.broadcast %340 : vector<8x1xf32> to vector<8x64xf32>
    %342 = arith.subf %336, %341 : vector<8x64xf32>
    %343 = arith.mulf %342, %342 : vector<8x64xf32>
    %cst_101 = arith.constant dense<0.000000e+00> : vector<8xf32>
    %344 = vector.multi_reduction <add>, %343, %cst_101 [1] : vector<8x64xf32> to vector<8xf32>
    %345 = vector.shape_cast %344 : vector<8xf32> to vector<8x1xf32>
    %cst_102 = arith.constant 6.400000e+01 : f32
    %346 = vector.broadcast %cst_102 : f32 to vector<8x1xf32>
    %347 = arith.divf %345, %346 : vector<8x1xf32>
    %348 = vector.broadcast %340 : vector<8x1xf32> to vector<8x64xf32>
    %349 = arith.subf %336, %348 : vector<8x64xf32>
    %cst_103 = arith.constant 9.99999974E-6 : f32
    %350 = vector.broadcast %cst_103 : f32 to vector<8x1xf32>
    %351 = arith.addf %347, %350 : vector<8x1xf32>
    %352 = math.rsqrt %351 : vector<8x1xf32>
    %353 = vector.broadcast %352 : vector<8x1xf32> to vector<8x64xf32>
    %354 = arith.mulf %349, %353 : vector<8x64xf32>
    %355 = vector.broadcast %4 : vector<1x64xf32> to vector<8x64xf32>
    %356 = arith.mulf %354, %355 : vector<8x64xf32>
    %357 = vector.broadcast %5 : vector<1x64xf32> to vector<8x64xf32>
    %358 = arith.addf %356, %357 : vector<8x64xf32>
    %359 = arith.addf %333, %358 : vector<8x64xf32>
    %360 = vector.extract_strided_slice %359 {offsets = [0, 0], sizes = [8, 32], strides = [1, 1]} : vector<8x64xf32> to vector<8x32xf32>
    %cst_104 = arith.constant 5.000000e-01 : f32
    %361 = vector.broadcast %cst_104 : f32 to vector<8x32xf32>
    %362 = arith.mulf %361, %360 : vector<8x32xf32>
    %363 = math.tanh %362 : vector<8x32xf32>
    %cst_105 = arith.constant 5.000000e-01 : f32
    %364 = vector.broadcast %cst_105 : f32 to vector<8x32xf32>
    %365 = arith.mulf %364, %363 : vector<8x32xf32>
    %cst_106 = arith.constant 5.000000e-01 : f32
    %366 = vector.broadcast %cst_106 : f32 to vector<8x32xf32>
    %367 = arith.addf %365, %366 : vector<8x32xf32>
    %368 = vector.extract_strided_slice %367 {offsets = [0, 0], sizes = [8, 16], strides = [1, 1]} : vector<8x32xf32> to vector<8x16xf32>
    %369 = vector.extract_strided_slice %367 {offsets = [0, 16], sizes = [8, 16], strides = [1, 1]} : vector<8x32xf32> to vector<8x16xf32>
    %370 = vector.extract_strided_slice %359 {offsets = [0, 32], sizes = [8, 16], strides = [1, 1]} : vector<8x64xf32> to vector<8x16xf32>
    %371 = math.tanh %370 : vector<8x16xf32>
    %372 = vector.extract_strided_slice %359 {offsets = [0, 48], sizes = [8, 16], strides = [1, 1]} : vector<8x64xf32> to vector<8x16xf32>
    %cst_107 = arith.constant 5.000000e-01 : f32
    %373 = vector.broadcast %cst_107 : f32 to vector<8x16xf32>
    %374 = arith.mulf %373, %372 : vector<8x16xf32>
    %375 = math.tanh %374 : vector<8x16xf32>
    %cst_108 = arith.constant 5.000000e-01 : f32
    %376 = vector.broadcast %cst_108 : f32 to vector<8x16xf32>
    %377 = arith.mulf %376, %375 : vector<8x16xf32>
    %cst_109 = arith.constant 5.000000e-01 : f32
    %378 = vector.broadcast %cst_109 : f32 to vector<8x16xf32>
    %379 = arith.addf %377, %378 : vector<8x16xf32>
    %380 = arith.mulf %369, %302 : vector<8x16xf32>
    %381 = arith.mulf %368, %371 : vector<8x16xf32>
    %382 = arith.addf %380, %381 : vector<8x16xf32>
    %cst_110 = arith.constant dense<0.000000e+00> : vector<8xf32>
    %383 = vector.multi_reduction <add>, %382, %cst_110 [1] : vector<8x16xf32> to vector<8xf32>
    %384 = vector.shape_cast %383 : vector<8xf32> to vector<8x1xf32>
    %cst_111 = arith.constant 1.600000e+01 : f32
    %385 = vector.broadcast %cst_111 : f32 to vector<8x1xf32>
    %386 = arith.divf %384, %385 : vector<8x1xf32>
    %387 = vector.broadcast %386 : vector<8x1xf32> to vector<8x16xf32>
    %388 = arith.subf %382, %387 : vector<8x16xf32>
    %389 = arith.mulf %388, %388 : vector<8x16xf32>
    %cst_112 = arith.constant dense<0.000000e+00> : vector<8xf32>
    %390 = vector.multi_reduction <add>, %389, %cst_112 [1] : vector<8x16xf32> to vector<8xf32>
    %391 = vector.shape_cast %390 : vector<8xf32> to vector<8x1xf32>
    %cst_113 = arith.constant 1.600000e+01 : f32
    %392 = vector.broadcast %cst_113 : f32 to vector<8x1xf32>
    %393 = arith.divf %391, %392 : vector<8x1xf32>
    %394 = vector.broadcast %386 : vector<8x1xf32> to vector<8x16xf32>
    %395 = arith.subf %382, %394 : vector<8x16xf32>
    %cst_114 = arith.constant 9.99999974E-6 : f32
    %396 = vector.broadcast %cst_114 : f32 to vector<8x1xf32>
    %397 = arith.addf %393, %396 : vector<8x1xf32>
    %398 = math.rsqrt %397 : vector<8x1xf32>
    %399 = vector.broadcast %398 : vector<8x1xf32> to vector<8x16xf32>
    %400 = arith.mulf %395, %399 : vector<8x16xf32>
    %401 = vector.broadcast %6 : vector<1x16xf32> to vector<8x16xf32>
    %402 = arith.mulf %400, %401 : vector<8x16xf32>
    %403 = vector.broadcast %7 : vector<1x16xf32> to vector<8x16xf32>
    %404 = arith.addf %402, %403 : vector<8x16xf32>
    %405 = math.tanh %404 : vector<8x16xf32>
    %406 = arith.mulf %379, %405 : vector<8x16xf32>
    %407 = arith.index_cast %c4_i32 : i32 to index
    %c0_115 = arith.constant 0 : index
    %c0_116 = arith.constant 0 : index
    %408 = vector.load %arg4[%407, %c0_115, %c0_116] : memref<8x8x16xf32, #tpu.memory_space<vmem>>, vector<1x8x16xf32>
    %409 = vector.shape_cast %408 : vector<1x8x16xf32> to vector<8x16xf32>
    %410 = vector.shape_cast %406 : vector<8x16xf32> to vector<1x8x16xf32>
    tpu.vector_store %arg4[%407, %c0_115, %c0_116], %410 {strides = array<i32>} : memref<8x8x16xf32, #tpu.memory_space<vmem>>, vector<1x8x16xf32>,
    %c5_i32 = arith.constant 5 : i32
    %411 = arith.index_cast %c5_i32 : i32 to index
    %c0_117 = arith.constant 0 : index
    %c0_118 = arith.constant 0 : index
    %412 = vector.load %arg1[%411, %c0_117, %c0_118] : memref<8x8x64xf32, #tpu.memory_space<vmem>>, vector<1x8x64xf32>
    %413 = vector.shape_cast %412 : vector<1x8x64xf32> to vector<8x64xf32>
    %cst_119 = arith.constant dense<0.000000e+00> : vector<8x64xf32>
    %414 = tpu.matmul %406, %8, %cst_119 {dimension_numbers = #tpu.dot_dimension_numbers<[1], [0], [0], [1], [0, 0, 1, 1], [], []>} : vector<8x16xf32>, vector<16x64xf32>, vector<8x64xf32> -> vector<8x64xf32>
    %415 = vector.broadcast %3 : vector<1x64xf32> to vector<8x64xf32>
    %416 = arith.addf %414, %415 : vector<8x64xf32>
    %cst_120 = arith.constant dense<0.000000e+00> : vector<8xf32>
    %417 = vector.multi_reduction <add>, %416, %cst_120 [1] : vector<8x64xf32> to vector<8xf32>
    %418 = vector.shape_cast %417 : vector<8xf32> to vector<8x1xf32>
    %cst_121 = arith.constant 6.400000e+01 : f32
    %419 = vector.broadcast %cst_121 : f32 to vector<8x1xf32>
    %420 = arith.divf %418, %419 : vector<8x1xf32>
    %421 = vector.broadcast %420 : vector<8x1xf32> to vector<8x64xf32>
    %422 = arith.subf %416, %421 : vector<8x64xf32>
    %423 = arith.mulf %422, %422 : vector<8x64xf32>
    %cst_122 = arith.constant dense<0.000000e+00> : vector<8xf32>
    %424 = vector.multi_reduction <add>, %423, %cst_122 [1] : vector<8x64xf32> to vector<8xf32>
    %425 = vector.shape_cast %424 : vector<8xf32> to vector<8x1xf32>
    %cst_123 = arith.constant 6.400000e+01 : f32
    %426 = vector.broadcast %cst_123 : f32 to vector<8x1xf32>
    %427 = arith.divf %425, %426 : vector<8x1xf32>
    %428 = vector.broadcast %420 : vector<8x1xf32> to vector<8x64xf32>
    %429 = arith.subf %416, %428 : vector<8x64xf32>
    %cst_124 = arith.constant 9.99999974E-6 : f32
    %430 = vector.broadcast %cst_124 : f32 to vector<8x1xf32>
    %431 = arith.addf %427, %430 : vector<8x1xf32>
    %432 = math.rsqrt %431 : vector<8x1xf32>
    %433 = vector.broadcast %432 : vector<8x1xf32> to vector<8x64xf32>
    %434 = arith.mulf %429, %433 : vector<8x64xf32>
    %435 = vector.broadcast %4 : vector<1x64xf32> to vector<8x64xf32>
    %436 = arith.mulf %434, %435 : vector<8x64xf32>
    %437 = vector.broadcast %5 : vector<1x64xf32> to vector<8x64xf32>
    %438 = arith.addf %436, %437 : vector<8x64xf32>
    %439 = arith.addf %413, %438 : vector<8x64xf32>
    %440 = vector.extract_strided_slice %439 {offsets = [0, 0], sizes = [8, 32], strides = [1, 1]} : vector<8x64xf32> to vector<8x32xf32>
    %cst_125 = arith.constant 5.000000e-01 : f32
    %441 = vector.broadcast %cst_125 : f32 to vector<8x32xf32>
    %442 = arith.mulf %441, %440 : vector<8x32xf32>
    %443 = math.tanh %442 : vector<8x32xf32>
    %cst_126 = arith.constant 5.000000e-01 : f32
    %444 = vector.broadcast %cst_126 : f32 to vector<8x32xf32>
    %445 = arith.mulf %444, %443 : vector<8x32xf32>
    %cst_127 = arith.constant 5.000000e-01 : f32
    %446 = vector.broadcast %cst_127 : f32 to vector<8x32xf32>
    %447 = arith.addf %445, %446 : vector<8x32xf32>
    %448 = vector.extract_strided_slice %447 {offsets = [0, 0], sizes = [8, 16], strides = [1, 1]} : vector<8x32xf32> to vector<8x16xf32>
    %449 = vector.extract_strided_slice %447 {offsets = [0, 16], sizes = [8, 16], strides = [1, 1]} : vector<8x32xf32> to vector<8x16xf32>
    %450 = vector.extract_strided_slice %439 {offsets = [0, 32], sizes = [8, 16], strides = [1, 1]} : vector<8x64xf32> to vector<8x16xf32>
    %451 = math.tanh %450 : vector<8x16xf32>
    %452 = vector.extract_strided_slice %439 {offsets = [0, 48], sizes = [8, 16], strides = [1, 1]} : vector<8x64xf32> to vector<8x16xf32>
    %cst_128 = arith.constant 5.000000e-01 : f32
    %453 = vector.broadcast %cst_128 : f32 to vector<8x16xf32>
    %454 = arith.mulf %453, %452 : vector<8x16xf32>
    %455 = math.tanh %454 : vector<8x16xf32>
    %cst_129 = arith.constant 5.000000e-01 : f32
    %456 = vector.broadcast %cst_129 : f32 to vector<8x16xf32>
    %457 = arith.mulf %456, %455 : vector<8x16xf32>
    %cst_130 = arith.constant 5.000000e-01 : f32
    %458 = vector.broadcast %cst_130 : f32 to vector<8x16xf32>
    %459 = arith.addf %457, %458 : vector<8x16xf32>
    %460 = arith.mulf %449, %382 : vector<8x16xf32>
    %461 = arith.mulf %448, %451 : vector<8x16xf32>
    %462 = arith.addf %460, %461 : vector<8x16xf32>
    %cst_131 = arith.constant dense<0.000000e+00> : vector<8xf32>
    %463 = vector.multi_reduction <add>, %462, %cst_131 [1] : vector<8x16xf32> to vector<8xf32>
    %464 = vector.shape_cast %463 : vector<8xf32> to vector<8x1xf32>
    %cst_132 = arith.constant 1.600000e+01 : f32
    %465 = vector.broadcast %cst_132 : f32 to vector<8x1xf32>
    %466 = arith.divf %464, %465 : vector<8x1xf32>
    %467 = vector.broadcast %466 : vector<8x1xf32> to vector<8x16xf32>
    %468 = arith.subf %462, %467 : vector<8x16xf32>
    %469 = arith.mulf %468, %468 : vector<8x16xf32>
    %cst_133 = arith.constant dense<0.000000e+00> : vector<8xf32>
    %470 = vector.multi_reduction <add>, %469, %cst_133 [1] : vector<8x16xf32> to vector<8xf32>
    %471 = vector.shape_cast %470 : vector<8xf32> to vector<8x1xf32>
    %cst_134 = arith.constant 1.600000e+01 : f32
    %472 = vector.broadcast %cst_134 : f32 to vector<8x1xf32>
    %473 = arith.divf %471, %472 : vector<8x1xf32>
    %474 = vector.broadcast %466 : vector<8x1xf32> to vector<8x16xf32>
    %475 = arith.subf %462, %474 : vector<8x16xf32>
    %cst_135 = arith.constant 9.99999974E-6 : f32
    %476 = vector.broadcast %cst_135 : f32 to vector<8x1xf32>
    %477 = arith.addf %473, %476 : vector<8x1xf32>
    %478 = math.rsqrt %477 : vector<8x1xf32>
    %479 = vector.broadcast %478 : vector<8x1xf32> to vector<8x16xf32>
    %480 = arith.mulf %475, %479 : vector<8x16xf32>
    %481 = vector.broadcast %6 : vector<1x16xf32> to vector<8x16xf32>
    %482 = arith.mulf %480, %481 : vector<8x16xf32>
    %483 = vector.broadcast %7 : vector<1x16xf32> to vector<8x16xf32>
    %484 = arith.addf %482, %483 : vector<8x16xf32>
    %485 = math.tanh %484 : vector<8x16xf32>
    %486 = arith.mulf %459, %485 : vector<8x16xf32>
    %487 = arith.index_cast %c5_i32 : i32 to index
    %c0_136 = arith.constant 0 : index
    %c0_137 = arith.constant 0 : index
    %488 = vector.load %arg4[%487, %c0_136, %c0_137] : memref<8x8x16xf32, #tpu.memory_space<vmem>>, vector<1x8x16xf32>
    %489 = vector.shape_cast %488 : vector<1x8x16xf32> to vector<8x16xf32>
    %490 = vector.shape_cast %486 : vector<8x16xf32> to vector<1x8x16xf32>
    tpu.vector_store %arg4[%487, %c0_136, %c0_137], %490 {strides = array<i32>} : memref<8x8x16xf32, #tpu.memory_space<vmem>>, vector<1x8x16xf32>,
    %c6_i32 = arith.constant 6 : i32
    %491 = arith.index_cast %c6_i32 : i32 to index
    %c0_138 = arith.constant 0 : index
    %c0_139 = arith.constant 0 : index
    %492 = vector.load %arg1[%491, %c0_138, %c0_139] : memref<8x8x64xf32, #tpu.memory_space<vmem>>, vector<1x8x64xf32>
    %493 = vector.shape_cast %492 : vector<1x8x64xf32> to vector<8x64xf32>
    %cst_140 = arith.constant dense<0.000000e+00> : vector<8x64xf32>
    %494 = tpu.matmul %486, %8, %cst_140 {dimension_numbers = #tpu.dot_dimension_numbers<[1], [0], [0], [1], [0, 0, 1, 1], [], []>} : vector<8x16xf32>, vector<16x64xf32>, vector<8x64xf32> -> vector<8x64xf32>
    %495 = vector.broadcast %3 : vector<1x64xf32> to vector<8x64xf32>
    %496 = arith.addf %494, %495 : vector<8x64xf32>
    %cst_141 = arith.constant dense<0.000000e+00> : vector<8xf32>
    %497 = vector.multi_reduction <add>, %496, %cst_141 [1] : vector<8x64xf32> to vector<8xf32>
    %498 = vector.shape_cast %497 : vector<8xf32> to vector<8x1xf32>
    %cst_142 = arith.constant 6.400000e+01 : f32
    %499 = vector.broadcast %cst_142 : f32 to vector<8x1xf32>
    %500 = arith.divf %498, %499 : vector<8x1xf32>
    %501 = vector.broadcast %500 : vector<8x1xf32> to vector<8x64xf32>
    %502 = arith.subf %496, %501 : vector<8x64xf32>
    %503 = arith.mulf %502, %502 : vector<8x64xf32>
    %cst_143 = arith.constant dense<0.000000e+00> : vector<8xf32>
    %504 = vector.multi_reduction <add>, %503, %cst_143 [1] : vector<8x64xf32> to vector<8xf32>
    %505 = vector.shape_cast %504 : vector<8xf32> to vector<8x1xf32>
    %cst_144 = arith.constant 6.400000e+01 : f32
    %506 = vector.broadcast %cst_144 : f32 to vector<8x1xf32>
    %507 = arith.divf %505, %506 : vector<8x1xf32>
    %508 = vector.broadcast %500 : vector<8x1xf32> to vector<8x64xf32>
    %509 = arith.subf %496, %508 : vector<8x64xf32>
    %cst_145 = arith.constant 9.99999974E-6 : f32
    %510 = vector.broadcast %cst_145 : f32 to vector<8x1xf32>
    %511 = arith.addf %507, %510 : vector<8x1xf32>
    %512 = math.rsqrt %511 : vector<8x1xf32>
    %513 = vector.broadcast %512 : vector<8x1xf32> to vector<8x64xf32>
    %514 = arith.mulf %509, %513 : vector<8x64xf32>
    %515 = vector.broadcast %4 : vector<1x64xf32> to vector<8x64xf32>
    %516 = arith.mulf %514, %515 : vector<8x64xf32>
    %517 = vector.broadcast %5 : vector<1x64xf32> to vector<8x64xf32>
    %518 = arith.addf %516, %517 : vector<8x64xf32>
    %519 = arith.addf %493, %518 : vector<8x64xf32>
    %520 = vector.extract_strided_slice %519 {offsets = [0, 0], sizes = [8, 32], strides = [1, 1]} : vector<8x64xf32> to vector<8x32xf32>
    %cst_146 = arith.constant 5.000000e-01 : f32
    %521 = vector.broadcast %cst_146 : f32 to vector<8x32xf32>
    %522 = arith.mulf %521, %520 : vector<8x32xf32>
    %523 = math.tanh %522 : vector<8x32xf32>
    %cst_147 = arith.constant 5.000000e-01 : f32
    %524 = vector.broadcast %cst_147 : f32 to vector<8x32xf32>
    %525 = arith.mulf %524, %523 : vector<8x32xf32>
    %cst_148 = arith.constant 5.000000e-01 : f32
    %526 = vector.broadcast %cst_148 : f32 to vector<8x32xf32>
    %527 = arith.addf %525, %526 : vector<8x32xf32>
    %528 = vector.extract_strided_slice %527 {offsets = [0, 0], sizes = [8, 16], strides = [1, 1]} : vector<8x32xf32> to vector<8x16xf32>
    %529 = vector.extract_strided_slice %527 {offsets = [0, 16], sizes = [8, 16], strides = [1, 1]} : vector<8x32xf32> to vector<8x16xf32>
    %530 = vector.extract_strided_slice %519 {offsets = [0, 32], sizes = [8, 16], strides = [1, 1]} : vector<8x64xf32> to vector<8x16xf32>
    %531 = math.tanh %530 : vector<8x16xf32>
    %532 = vector.extract_strided_slice %519 {offsets = [0, 48], sizes = [8, 16], strides = [1, 1]} : vector<8x64xf32> to vector<8x16xf32>
    %cst_149 = arith.constant 5.000000e-01 : f32
    %533 = vector.broadcast %cst_149 : f32 to vector<8x16xf32>
    %534 = arith.mulf %533, %532 : vector<8x16xf32>
    %535 = math.tanh %534 : vector<8x16xf32>
    %cst_150 = arith.constant 5.000000e-01 : f32
    %536 = vector.broadcast %cst_150 : f32 to vector<8x16xf32>
    %537 = arith.mulf %536, %535 : vector<8x16xf32>
    %cst_151 = arith.constant 5.000000e-01 : f32
    %538 = vector.broadcast %cst_151 : f32 to vector<8x16xf32>
    %539 = arith.addf %537, %538 : vector<8x16xf32>
    %540 = arith.mulf %529, %462 : vector<8x16xf32>
    %541 = arith.mulf %528, %531 : vector<8x16xf32>
    %542 = arith.addf %540, %541 : vector<8x16xf32>
    %cst_152 = arith.constant dense<0.000000e+00> : vector<8xf32>
    %543 = vector.multi_reduction <add>, %542, %cst_152 [1] : vector<8x16xf32> to vector<8xf32>
    %544 = vector.shape_cast %543 : vector<8xf32> to vector<8x1xf32>
    %cst_153 = arith.constant 1.600000e+01 : f32
    %545 = vector.broadcast %cst_153 : f32 to vector<8x1xf32>
    %546 = arith.divf %544, %545 : vector<8x1xf32>
    %547 = vector.broadcast %546 : vector<8x1xf32> to vector<8x16xf32>
    %548 = arith.subf %542, %547 : vector<8x16xf32>
    %549 = arith.mulf %548, %548 : vector<8x16xf32>
    %cst_154 = arith.constant dense<0.000000e+00> : vector<8xf32>
    %550 = vector.multi_reduction <add>, %549, %cst_154 [1] : vector<8x16xf32> to vector<8xf32>
    %551 = vector.shape_cast %550 : vector<8xf32> to vector<8x1xf32>
    %cst_155 = arith.constant 1.600000e+01 : f32
    %552 = vector.broadcast %cst_155 : f32 to vector<8x1xf32>
    %553 = arith.divf %551, %552 : vector<8x1xf32>
    %554 = vector.broadcast %546 : vector<8x1xf32> to vector<8x16xf32>
    %555 = arith.subf %542, %554 : vector<8x16xf32>
    %cst_156 = arith.constant 9.99999974E-6 : f32
    %556 = vector.broadcast %cst_156 : f32 to vector<8x1xf32>
    %557 = arith.addf %553, %556 : vector<8x1xf32>
    %558 = math.rsqrt %557 : vector<8x1xf32>
    %559 = vector.broadcast %558 : vector<8x1xf32> to vector<8x16xf32>
    %560 = arith.mulf %555, %559 : vector<8x16xf32>
    %561 = vector.broadcast %6 : vector<1x16xf32> to vector<8x16xf32>
    %562 = arith.mulf %560, %561 : vector<8x16xf32>
    %563 = vector.broadcast %7 : vector<1x16xf32> to vector<8x16xf32>
    %564 = arith.addf %562, %563 : vector<8x16xf32>
    %565 = math.tanh %564 : vector<8x16xf32>
    %566 = arith.mulf %539, %565 : vector<8x16xf32>
    %567 = arith.index_cast %c6_i32 : i32 to index
    %c0_157 = arith.constant 0 : index
    %c0_158 = arith.constant 0 : index
    %568 = vector.load %arg4[%567, %c0_157, %c0_158] : memref<8x8x16xf32, #tpu.memory_space<vmem>>, vector<1x8x16xf32>
    %569 = vector.shape_cast %568 : vector<1x8x16xf32> to vector<8x16xf32>
    %570 = vector.shape_cast %566 : vector<8x16xf32> to vector<1x8x16xf32>
    tpu.vector_store %arg4[%567, %c0_157, %c0_158], %570 {strides = array<i32>} : memref<8x8x16xf32, #tpu.memory_space<vmem>>, vector<1x8x16xf32>,
    %c7_i32 = arith.constant 7 : i32
    %571 = arith.index_cast %c7_i32 : i32 to index
    %c0_159 = arith.constant 0 : index
    %c0_160 = arith.constant 0 : index
    %572 = vector.load %arg1[%571, %c0_159, %c0_160] : memref<8x8x64xf32, #tpu.memory_space<vmem>>, vector<1x8x64xf32>
    %573 = vector.shape_cast %572 : vector<1x8x64xf32> to vector<8x64xf32>
    %cst_161 = arith.constant dense<0.000000e+00> : vector<8x64xf32>
    %574 = tpu.matmul %566, %8, %cst_161 {dimension_numbers = #tpu.dot_dimension_numbers<[1], [0], [0], [1], [0, 0, 1, 1], [], []>} : vector<8x16xf32>, vector<16x64xf32>, vector<8x64xf32> -> vector<8x64xf32>
    %575 = vector.broadcast %3 : vector<1x64xf32> to vector<8x64xf32>
    %576 = arith.addf %574, %575 : vector<8x64xf32>
    %cst_162 = arith.constant dense<0.000000e+00> : vector<8xf32>
    %577 = vector.multi_reduction <add>, %576, %cst_162 [1] : vector<8x64xf32> to vector<8xf32>
    %578 = vector.shape_cast %577 : vector<8xf32> to vector<8x1xf32>
    %cst_163 = arith.constant 6.400000e+01 : f32
    %579 = vector.broadcast %cst_163 : f32 to vector<8x1xf32>
    %580 = arith.divf %578, %579 : vector<8x1xf32>
    %581 = vector.broadcast %580 : vector<8x1xf32> to vector<8x64xf32>
    %582 = arith.subf %576, %581 : vector<8x64xf32>
    %583 = arith.mulf %582, %582 : vector<8x64xf32>
    %cst_164 = arith.constant dense<0.000000e+00> : vector<8xf32>
    %584 = vector.multi_reduction <add>, %583, %cst_164 [1] : vector<8x64xf32> to vector<8xf32>
    %585 = vector.shape_cast %584 : vector<8xf32> to vector<8x1xf32>
    %cst_165 = arith.constant 6.400000e+01 : f32
    %586 = vector.broadcast %cst_165 : f32 to vector<8x1xf32>
    %587 = arith.divf %585, %586 : vector<8x1xf32>
    %588 = vector.broadcast %580 : vector<8x1xf32> to vector<8x64xf32>
    %589 = arith.subf %576, %588 : vector<8x64xf32>
    %cst_166 = arith.constant 9.99999974E-6 : f32
    %590 = vector.broadcast %cst_166 : f32 to vector<8x1xf32>
    %591 = arith.addf %587, %590 : vector<8x1xf32>
    %592 = math.rsqrt %591 : vector<8x1xf32>
    %593 = vector.broadcast %592 : vector<8x1xf32> to vector<8x64xf32>
    %594 = arith.mulf %589, %593 : vector<8x64xf32>
    %595 = vector.broadcast %4 : vector<1x64xf32> to vector<8x64xf32>
    %596 = arith.mulf %594, %595 : vector<8x64xf32>
    %597 = vector.broadcast %5 : vector<1x64xf32> to vector<8x64xf32>
    %598 = arith.addf %596, %597 : vector<8x64xf32>
    %599 = arith.addf %573, %598 : vector<8x64xf32>
    %600 = vector.extract_strided_slice %599 {offsets = [0, 0], sizes = [8, 32], strides = [1, 1]} : vector<8x64xf32> to vector<8x32xf32>
    %cst_167 = arith.constant 5.000000e-01 : f32
    %601 = vector.broadcast %cst_167 : f32 to vector<8x32xf32>
    %602 = arith.mulf %601, %600 : vector<8x32xf32>
    %603 = math.tanh %602 : vector<8x32xf32>
    %cst_168 = arith.constant 5.000000e-01 : f32
    %604 = vector.broadcast %cst_168 : f32 to vector<8x32xf32>
    %605 = arith.mulf %604, %603 : vector<8x32xf32>
    %cst_169 = arith.constant 5.000000e-01 : f32
    %606 = vector.broadcast %cst_169 : f32 to vector<8x32xf32>
    %607 = arith.addf %605, %606 : vector<8x32xf32>
    %608 = vector.extract_strided_slice %607 {offsets = [0, 0], sizes = [8, 16], strides = [1, 1]} : vector<8x32xf32> to vector<8x16xf32>
    %609 = vector.extract_strided_slice %607 {offsets = [0, 16], sizes = [8, 16], strides = [1, 1]} : vector<8x32xf32> to vector<8x16xf32>
    %610 = vector.extract_strided_slice %599 {offsets = [0, 32], sizes = [8, 16], strides = [1, 1]} : vector<8x64xf32> to vector<8x16xf32>
    %611 = math.tanh %610 : vector<8x16xf32>
    %612 = vector.extract_strided_slice %599 {offsets = [0, 48], sizes = [8, 16], strides = [1, 1]} : vector<8x64xf32> to vector<8x16xf32>
    %cst_170 = arith.constant 5.000000e-01 : f32
    %613 = vector.broadcast %cst_170 : f32 to vector<8x16xf32>
    %614 = arith.mulf %613, %612 : vector<8x16xf32>
    %615 = math.tanh %614 : vector<8x16xf32>
    %cst_171 = arith.constant 5.000000e-01 : f32
    %616 = vector.broadcast %cst_171 : f32 to vector<8x16xf32>
    %617 = arith.mulf %616, %615 : vector<8x16xf32>
    %cst_172 = arith.constant 5.000000e-01 : f32
    %618 = vector.broadcast %cst_172 : f32 to vector<8x16xf32>
    %619 = arith.addf %617, %618 : vector<8x16xf32>
    %620 = arith.mulf %609, %542 : vector<8x16xf32>
    %621 = arith.mulf %608, %611 : vector<8x16xf32>
    %622 = arith.addf %620, %621 : vector<8x16xf32>
    %cst_173 = arith.constant dense<0.000000e+00> : vector<8xf32>
    %623 = vector.multi_reduction <add>, %622, %cst_173 [1] : vector<8x16xf32> to vector<8xf32>
    %624 = vector.shape_cast %623 : vector<8xf32> to vector<8x1xf32>
    %cst_174 = arith.constant 1.600000e+01 : f32
    %625 = vector.broadcast %cst_174 : f32 to vector<8x1xf32>
    %626 = arith.divf %624, %625 : vector<8x1xf32>
    %627 = vector.broadcast %626 : vector<8x1xf32> to vector<8x16xf32>
    %628 = arith.subf %622, %627 : vector<8x16xf32>
    %629 = arith.mulf %628, %628 : vector<8x16xf32>
    %cst_175 = arith.constant dense<0.000000e+00> : vector<8xf32>
    %630 = vector.multi_reduction <add>, %629, %cst_175 [1] : vector<8x16xf32> to vector<8xf32>
    %631 = vector.shape_cast %630 : vector<8xf32> to vector<8x1xf32>
    %cst_176 = arith.constant 1.600000e+01 : f32
    %632 = vector.broadcast %cst_176 : f32 to vector<8x1xf32>
    %633 = arith.divf %631, %632 : vector<8x1xf32>
    %634 = vector.broadcast %626 : vector<8x1xf32> to vector<8x16xf32>
    %635 = arith.subf %622, %634 : vector<8x16xf32>
    %cst_177 = arith.constant 9.99999974E-6 : f32
    %636 = vector.broadcast %cst_177 : f32 to vector<8x1xf32>
    %637 = arith.addf %633, %636 : vector<8x1xf32>
    %638 = math.rsqrt %637 : vector<8x1xf32>
    %639 = vector.broadcast %638 : vector<8x1xf32> to vector<8x16xf32>
    %640 = arith.mulf %635, %639 : vector<8x16xf32>
    %641 = vector.broadcast %6 : vector<1x16xf32> to vector<8x16xf32>
    %642 = arith.mulf %640, %641 : vector<8x16xf32>
    %643 = vector.broadcast %7 : vector<1x16xf32> to vector<8x16xf32>
    %644 = arith.addf %642, %643 : vector<8x16xf32>
    %645 = math.tanh %644 : vector<8x16xf32>
    %646 = arith.mulf %619, %645 : vector<8x16xf32>
    %647 = arith.index_cast %c7_i32 : i32 to index
    %c0_178 = arith.constant 0 : index
    %c0_179 = arith.constant 0 : index
    %648 = vector.load %arg4[%647, %c0_178, %c0_179] : memref<8x8x16xf32, #tpu.memory_space<vmem>>, vector<1x8x16xf32>
    %649 = vector.shape_cast %648 : vector<1x8x16xf32> to vector<8x16xf32>
    %650 = vector.shape_cast %646 : vector<8x16xf32> to vector<1x8x16xf32>
    tpu.vector_store %arg4[%647, %c0_178, %c0_179], %650 {strides = array<i32>} : memref<8x8x16xf32, #tpu.memory_space<vmem>>, vector<1x8x16xf32>,
    %c8_i32 = arith.constant 8 : i32
    %c0_180 = arith.constant 0 : index
    %c0_181 = arith.constant 0 : index
    %651 = vector.load %arg5[%c0_180, %c0_181] : memref<8x16xf32, #tpu.memory_space<vmem>>, vector<8x16xf32>
    tpu.vector_store %arg5[%c0_180, %c0_181], %646 {strides = array<i32>} : memref<8x16xf32, #tpu.memory_space<vmem>>, vector<8x16xf32>,
    %c0_182 = arith.constant 0 : index
    %c0_183 = arith.constant 0 : index
    %652 = vector.load %arg6[%c0_182, %c0_183] : memref<8x16xf32, #tpu.memory_space<vmem>>, vector<8x16xf32>
    tpu.vector_store %arg6[%c0_182, %c0_183], %622 {strides = array<i32>} : memref<8x16xf32, #tpu.memory_space<vmem>>, vector<8x16xf32>,
    return
  }
  func.func @transform_0(%arg0: i32) -> (i32, i32, i32) {
    %c0_i32 = arith.constant 0 : i32
    %c0_i32_0 = arith.constant 0 : i32
    %c0_i32_1 = arith.constant 0 : i32
    return %arg0, %c0_i32, %c0_i32_0 : i32, i32, i32
  }
  func.func @transform_1(%arg0: i32) -> (i32, i32) {
    %c0_i32 = arith.constant 0 : i32
    %c0_i32_0 = arith.constant 0 : i32
    %c0_i32_1 = arith.constant 0 : i32
    return %c0_i32, %c0_i32_0 : i32, i32
  }
  func.func @transform_2(%arg0: i32) -> (i32, i32) {
    %c0_i32 = arith.constant 0 : i32
    %c0_i32_0 = arith.constant 0 : i32
    %c0_i32_1 = arith.constant 0 : i32
    return %c0_i32, %c0_i32_0 : i32, i32
  }
  func.func @transform_3(%arg0: i32) -> (i32, i32, i32) {
    %c0_i32 = arith.constant 0 : i32
    %c0_i32_0 = arith.constant 0 : i32
    %c0_i32_1 = arith.constant 0 : i32
    return %arg0, %c0_i32, %c0_i32_0 : i32, i32, i32
  }
}

</mosaic_0001>

<bundles_post_ra>
// kernel: ln_lstm_forward.1
= control target key start
LH: loop header
LB: loop body
LE: loop exit
PB: predicated region body
PF: predicated region fallthrough
CT: control target
= control target key end

     0   :  { %vm18_vm0 = vcmask 130048   ;;  %v1062_v2 = vmov 0.0   ;;  %vm56_vm1 = vcmask 523264   ;;  %v1063_v8 = vmov 64.0   ;;  %s1064_s23 = smov 96   ;;  %s1065_s24 = smov 16   ;;  %s1398_s1 = inlined_call_operand.vmem [shape: f32[16,64], index: 1, kind: input, shape index: {}]   ;;  %s1399_s2 = inlined_call_operand.vmem [shape: f32[8,64], index: 2, kind: input, shape index: {}]   ;;  %s1400_s0 = inlined_call_operand.vmem [shape: f32[8,8,64], index: 0, kind: input, shape index: {}]   ;;  %s1401_s3 = inlined_call_operand.vmem [shape: f32[8,8,16], index: 3, kind: output, shape index: {}]  }
   0x1   :  { %v27_v0 = vld [vmem:[%s1398_s1 + $0x8] sm:$0xff]  ;;  %v26_v1 = vld [vmem:[%s1398_s1] sm:$0xff]  ;;  %19 = vst.msk [vmem:[#allocation2] sm:$0xff] %vm18_vm0, %v1062_v2  ;;  %975 = vrcp.f32 %v1063_v8  ;;  %s1066_s25 = smov 112   ;;  %v1067_v51 = vmov 16.0   ;;  %s1068_s30 = smov 32  }
   0x2   :  { %50 = vmatpush.msra.mxu0 %v27_v0  ;;  %20 = vst.msk [vmem:[#allocation3] sm:$0xff] %vm18_vm0, %v1062_v2  ;;  %189 = vmatpush.msra.mxu1 %v27_v0  ;;  %v1102_v4 = vld [vmem:[%s1399_s2] ss:$0 sm:$0xff]  ;;  %v1114_v29 = vld [vmem:[%s1399_s2 + $0x1] ss:$0 sm:$0xff]  ;;  %s1069_s4 = smov 80  }
   0x3   :  { %298 = vmatpush.msra.mxu2 %v27_v0  ;;  %407 = vmatpush.msra.mxu3 %v27_v0  ;;  %v1119_v32 = vld [vmem:[%s1399_s2 + $0x2] ss:$0 sm:$0xff]  ;;  %v973_v62 = vld [vmem:[%s1399_s2 + $0x3] ss:$0 sm:$0xff]  ;;  %v974_v63 = vld [vmem:[%s1399_s2 + $0x4] ss:$0 sm:$0xff] }
   0x4   :  { %51 = vmatpush.msra.mxu0 %v26_v1  ;;  %190 = vmatpush.msra.mxu1 %v26_v1  ;;  %v30_v34 = vld [vmem:[%s1400_s0] sm:$0xff] }
   0x5   :  { %299 = vmatpush.msra.mxu2 %v26_v1  ;;  %408 = vmatpush.msra.mxu3 %v26_v1 }
   0x6   :  { %516 = vmatpush.msrb.mxu0 %v27_v0  ;;  %625 = vmatpush.msrb.mxu1 %v27_v0 }
   0x7   :  { %734 = vmatpush.msrb.mxu2 %v27_v0  ;;  %843 = vmatpush.msrb.mxu3 %v27_v0  ;;  %v976_v9 = vpop.eup %975 }
   0x8   :  { %v28_v3 = vld [vmem:[#allocation2] sm:$0xff]  ;;  %517 = vmatpush.msrb.mxu0 %v26_v1  ;;  %626 = vmatpush.msrb.mxu1 %v26_v1  ;;  %v61_v10 = vmul.f32 64.0, %v976_v9  ;;  %vm65_vm2 = vweird.f32 %v976_v9 }
   0x9   :  { %940 = vmatmul.msk.f32.vlgmr.msra.gmra.mxu0 %vm18_vm0, %v28_v3  ;;  %735 = vmatpush.msrb.mxu2 %v26_v1  ;;  %v29_v38 = vld [vmem:[#allocation3] sm:$0xff] }
   0xa   :  { %844 = vmatpush.msrb.mxu3 %v26_v1  ;;  %v62_v11 = vsub.f32 1.0, %v61_v10 }
   0xc   :  { %v63_v12 = vmul.f32 %v976_v9, %v62_v11 }
   0xe   :  { %v64_v13 = vadd.f32 %v976_v9, %v63_v12 }
  0x10   :  { %v1106_v14 = vsel %vm65_vm2, %v976_v9, %v64_v13 }
  0x86   :  { %v53_v5 = vpop.f32.mrf.mxu0 }
  0x87   :  { %v54_v6 = vadd.f32 %v1102_v4, %v53_v5 }
  0x89   :  { %v57_v7 = vsel %vm56_vm1, %v54_v6, 0.0 }
  0x8a   :  { %58 = vadd.xlane.f32.xlu0 %v57_v7 }
  0xfd   :  { %v59_v15 = vpop.xlane.xlu0 %58 }
  0xfe   :  { %v67_v16 = vmul.f32 %v1106_v14, %v59_v15 }
 0x100   :  { %v68_v17 = vsub.f32 %v54_v6, %v67_v16 }
 0x102   :  { %v69_v18 = vmul.f32 %v68_v17, %v68_v17 }
 0x104   :  { %v70_v19 = vsel %vm56_vm1, %v69_v18, 0.0 }
 0x105   :  { %71 = vadd.xlane.f32.xlu0 %v70_v19 }
 0x178   :  { %v72_v20 = vpop.xlane.xlu0 %71 }
 0x179   :  { %v73_v21 = vmul.f32 %v72_v20, %v1106_v14 }
 0x17b   :  { %v74_v22 = vadd.f32 1e-05, %v73_v21 }
 0x17d   :  { %977 = vrsqrt.f32 %v74_v22  ;;  %vm81_vm4 = vweird.f32 %v74_v22 }
 0x183   :  { %v978_v23 = vpop.eup %977 }
 0x184   :  { %v76_v24 = vmul.f32 %v978_v23, %v74_v22  ;;  %vm82_vm3 = vweird.f32 %v978_v23 }
 0x185   :  { %vm83_vm5 = vmor %vm81_vm4, %vm82_vm3 }
 0x186   :  { %v77_v25 = vmul.f32 %v978_v23, %v76_v24 }
 0x188   :  { %v78_v26 = vmul.f32 0.5, %v77_v25 }
 0x18a   :  { %v79_v27 = vsub.f32 1.5, %v78_v26 }
 0x18c   :  { %v80_v28 = vmul.f32 %v978_v23, %v79_v27 }
 0x18e   :  { %v84_v30 = vsel %vm83_vm5, %v978_v23, %v80_v28 }
 0x18f   :  { %v85_v31 = vmul.f32 %v84_v30, %v68_v17 }
 0x191   :  { %v87_v33 = vmul.f32 %v1114_v29, %v85_v31 }
 0x193   :  { %v89_v35 = vadd.f32 %v1119_v32, %v87_v33 }
 0x195   :  { %v90_v36 = vadd.f32 %v89_v35, %v30_v34 }
 0x197   :  { %979 = vtanh.f32 %v90_v36  ;;  %v91_v39 = vmul.f32 0.5, %v90_v36 }
 0x199   :  { %981 = vtanh.f32 %v91_v39 }
 0x19a   :  { %983 = vrcp.f32 %v1067_v51 }
 0x19d   :  { %v980_v37 = vpop.eup %979 }
 0x19e   :  { %102 = vrot.lane.b32.xlu1 %v980_v37, %s1064_s23 }
 0x19f   :  { %v982_v40 = vpop.eup %981 }
 0x1a0   :  { %v93_v41 = vmul.f32 0.5, %v982_v40  ;;  %v984_v52 = vpop.eup %983 }
 0x1a1   :  { %v119_v53 = vmul.f32 16.0, %v984_v52  ;;  %vm123_vm6 = vweird.f32 %v984_v52 }
 0x1a2   :  { %v94_v42 = vadd.f32 0.5, %v93_v41 }
 0x1a3   :  { %v120_v54 = vsub.f32 1.0, %v119_v53 }
 0x1a5   :  { %v121_v55 = vmul.f32 %v984_v52, %v120_v54 }
 0x1a6   :  { %97 = vrot.lane.b32.xlu1 %v29_v38, %s1065_s24 }
 0x1a7   :  { %v122_v56 = vadd.f32 %v984_v52, %v121_v55 }
 0x1a9   :  { %v1134_v57 = vsel %vm123_vm6, %v984_v52, %v122_v56 }
 0x210   :  { %v103_v43 = vpop.permute.xlu1 %102 }
 0x211   :  { %v105_v44 = vmul.f32 %v103_v43, %v94_v42 }
 0x213   :  { %107 = vrot.lane.b32.xlu2 %v105_v44, %s1065_s24 }
 0x218   :  { %v98_v45 = vpop.permute.xlu1 %97 }
 0x219   :  { %v100_v46 = vmul.f32 %v98_v45, %v94_v42  ;;  %v941_v45 = vld [vmem:[%s1400_s0 + $0x8] sm:$0xff] }
 0x26d   :  { %v108_v47 = vpop.permute.xlu2 %107 }
 0x26e   :  { %v1129_v48 = vadd.f32 %v108_v47, %v100_v46 }
 0x270   :  { %112 = vrot.lane.b32.xlu2 %v1129_v48, %s1066_s25 }
 0x2ca   :  { %v113_v49 = vpop.permute.xlu2 %112 }
 0x2cb   :  { %v115_v50 = vsel %vm18_vm0, %v113_v49, 0.0 }
 0x2cc   :  { %116 = vadd.xlane.f32.xlu0 %v115_v50 }
 0x2e0   :  { %150 = vrot.lane.b32.xlu0 %v973_v62, %s1065_s24 }
 0x33f   :  { %v117_v58 = vpop.xlane.xlu0 %116 }
 0x340   :  { %v125_v59 = vmul.f32 %v1134_v57, %v117_v58 }
 0x342   :  { %v126_v60 = vsub.f32 %v1129_v48, %v125_v59 }
 0x344   :  { %v127_v61 = vmul.f32 %v126_v60, %v126_v60 }
 0x346   :  { %129 = vrot.lane.b32.xlu1 %v127_v61, %s1066_s25 }
 0x34e   :  { %156 = vrot.lane.b32.xlu1 %v974_v63, %s1065_s24 }
 0x352   :  { %v1149_v13 = vpop.permute.xlu0 %150 }
 0x3b8   :  { %v130_v0 = vpop.permute.xlu1 %129 }
 0x3b9   :  { %v132_v1 = vsel %vm18_vm0, %v130_v0, 0.0 }
 0x3ba   :  { %133 = vadd.xlane.f32.xlu2 %v132_v1 }
 0x3c0   :  { %v1151_v16 = vpop.permute.xlu1 %156 }
 0x42d   :  { %v134_v2 = vpop.xlane.xlu2 %133 }
 0x42e   :  { %v135_v3 = vmul.f32 %v134_v2, %v1134_v57 }
 0x430   :  { %v136_v5 = vadd.f32 1e-05, %v135_v3 }
 0x432   :  { %985 = vrsqrt.f32 %v136_v5  ;;  %vm143_vm8 = vweird.f32 %v136_v5 }
 0x438   :  { %v986_v6 = vpop.eup %985 }
 0x439   :  { %v138_v7 = vmul.f32 %v986_v6, %v136_v5  ;;  %vm144_vm7 = vweird.f32 %v986_v6 }
 0x43a   :  { %vm145_vm9 = vmor %vm143_vm8, %vm144_vm7 }
 0x43b   :  { %v139_v8 = vmul.f32 %v986_v6, %v138_v7 }
 0x43d   :  { %v140_v9 = vmul.f32 0.5, %v139_v8 }
 0x43f   :  { %v141_v10 = vsub.f32 1.5, %v140_v9 }
 0x441   :  { %v142_v11 = vmul.f32 %v986_v6, %v141_v10 }
 0x443   :  { %v146_v12 = vsel %vm145_vm9, %v986_v6, %v142_v11 }
 0x444   :  { %v147_v15 = vmul.f32 %v146_v12, %v126_v60 }
 0x446   :  { %v153_v17 = vmul.f32 %v1149_v13, %v147_v15 }
 0x448   :  { %v159_v18 = vadd.f32 %v1151_v16, %v153_v17 }
 0x44a   :  { %987 = vtanh.f32 %v159_v18 }
 0x450   :  { %v988_v19 = vpop.eup %987 }
 0x451   :  { %162 = vrot.lane.b32.xlu1 %v988_v19, %s1068_s30 }
 0x4c3   :  { %v163_v20 = vpop.permute.xlu1 %162 }
 0x4c4   :  { %v165_v21 = vmul.f32 %v163_v20, %v94_v42 }
 0x4c6   :  { %167 = vrot.lane.b32.xlu1 %v165_v21, %s1069_s4 }
 0x538   :  { %v168_v22 = vpop.permute.xlu1 %167 }
 0x539   :  { %170 = vst.msk [vmem:[%s1401_s3] sm:$0xff] %vm18_vm0, %v168_v22  ;;  %942 = vmatmul.msk.f32.vlgmr.msra.gmra.mxu1 %vm18_vm0, %v168_v22 }
 0x5b6   :  { %v192_v23 = vpop.f32.mrf.mxu1 }
 0x5b7   :  { %v193_v24 = vadd.f32 %v1102_v4, %v192_v23 }
 0x5b9   :  { %v195_v25 = vsel %vm56_vm1, %v193_v24, 0.0 }
 0x5ba   :  { %196 = vadd.xlane.f32.xlu0 %v195_v25 }
 0x62d   :  { %v197_v26 = vpop.xlane.xlu0 %196 }
 0x62e   :  { %v198_v27 = vmul.f32 %v197_v26, %v1106_v14 }
 0x630   :  { %v199_v28 = vsub.f32 %v193_v24, %v198_v27 }
 0x632   :  { %v200_v30 = vmul.f32 %v199_v28, %v199_v28 }
 0x634   :  { %v201_v31 = vsel %vm56_vm1, %v200_v30, 0.0 }
 0x635   :  { %202 = vadd.xlane.f32.xlu1 %v201_v31 }
 0x6a8   :  { %v203_v33 = vpop.xlane.xlu1 %202 }
 0x6a9   :  { %v204_v34 = vmul.f32 %v203_v33, %v1106_v14 }
 0x6ab   :  { %v205_v35 = vadd.f32 1e-05, %v204_v34 }
 0x6ad   :  { %989 = vrsqrt.f32 %v205_v35  ;;  %vm212_vm11 = vweird.f32 %v205_v35 }
 0x6b3   :  { %v990_v36 = vpop.eup %989 }
 0x6b4   :  { %v207_v37 = vmul.f32 %v990_v36, %v205_v35  ;;  %vm213_vm10 = vweird.f32 %v990_v36 }
 0x6b5   :  { %vm214_vm12 = vmor %vm212_vm11, %vm213_vm10 }
 0x6b6   :  { %v208_v38 = vmul.f32 %v990_v36, %v207_v37 }
 0x6b8   :  { %v209_v39 = vmul.f32 0.5, %v208_v38 }
 0x6ba   :  { %v210_v40 = vsub.f32 1.5, %v209_v39 }
 0x6bc   :  { %v211_v41 = vmul.f32 %v990_v36, %v210_v40 }
 0x6be   :  { %v215_v42 = vsel %vm214_vm12, %v990_v36, %v211_v41 }
 0x6bf   :  { %v216_v43 = vmul.f32 %v215_v42, %v199_v28 }
 0x6c1   :  { %v217_v44 = vmul.f32 %v1114_v29, %v216_v43 }
 0x6c3   :  { %v218_v46 = vadd.f32 %v1119_v32, %v217_v44 }
 0x6c5   :  { %v219_v47 = vadd.f32 %v941_v45, %v218_v46  ;;  %v944_v46 = vld [vmem:[%s1400_s0 + $0x10] sm:$0xff] }
 0x6c7   :  { %991 = vtanh.f32 %v219_v47  ;;  %v220_v50 = vmul.f32 0.5, %v219_v47 }
 0x6c9   :  { %993 = vtanh.f32 %v220_v50 }
 0x6cd   :  { %v992_v49 = vpop.eup %991 }
 0x6ce   :  { %227 = vrot.lane.b32.xlu2 %v992_v49, %s1064_s23 }
 0x6cf   :  { %v994_v51 = vpop.eup %993 }
 0x6d0   :  { %v222_v52 = vmul.f32 0.5, %v994_v51 }
 0x6d2   :  { %v223_v53 = vadd.f32 0.5, %v222_v52 }
 0x6d4   :  { %v225_v56 = vmul.f32 %v223_v53, %v1129_v48 }
 0x728   :  { %v228_v54 = vpop.permute.xlu2 %227 }
 0x729   :  { %v230_v55 = vmul.f32 %v228_v54, %v223_v53 }
 0x72b   :  { %232 = vrot.lane.b32.xlu2 %v230_v55, %s1065_s24 }
 0x785   :  { %v233_v58 = vpop.permute.xlu2 %232 }
 0x786   :  { %v1175_v59 = vadd.f32 %v233_v58, %v225_v56 }
 0x788   :  { %237 = vrot.lane.b32.xlu0 %v1175_v59, %s1066_s25 }
 0x7fa   :  { %v238_v60 = vpop.permute.xlu0 %237 }
 0x7fb   :  { %v240_v61 = vsel %vm18_vm0, %v238_v60, 0.0 }
 0x7fc   :  { %241 = vadd.xlane.f32.xlu2 %v240_v61 }
 0x86f   :  { %v242_v62 = vpop.xlane.xlu2 %241 }
 0x870   :  { %v243_v63 = vmul.f32 %v242_v62, %v1134_v57 }
 0x872   :  { %v244_v0 = vsub.f32 %v1175_v59, %v243_v63 }
 0x874   :  { %v245_v1 = vmul.f32 %v244_v0, %v244_v0 }
 0x876   :  { %247 = vrot.lane.b32.xlu1 %v245_v1, %s1066_s25 }
 0x8e8   :  { %v248_v2 = vpop.permute.xlu1 %247 }
 0x8e9   :  { %v250_v48 = vsel %vm18_vm0, %v248_v2, 0.0 }
 0x8ea   :  { %251 = vadd.xlane.f32.xlu0 %v250_v48 }
 0x95d   :  { %v252_v3 = vpop.xlane.xlu0 %251 }
 0x95e   :  { %v253_v5 = vmul.f32 %v252_v3, %v1134_v57 }
 0x960   :  { %v254_v6 = vadd.f32 1e-05, %v253_v5 }
 0x962   :  { %995 = vrsqrt.f32 %v254_v6  ;;  %vm261_vm14 = vweird.f32 %v254_v6 }
 0x968   :  { %v996_v7 = vpop.eup %995 }
 0x969   :  { %v256_v8 = vmul.f32 %v996_v7, %v254_v6  ;;  %vm262_vm13 = vweird.f32 %v996_v7 }
 0x96a   :  { %vm263_vm15 = vmor %vm261_vm14, %vm262_vm13 }
 0x96b   :  { %v257_v9 = vmul.f32 %v996_v7, %v256_v8 }
 0x96d   :  { %v258_v10 = vmul.f32 0.5, %v257_v9 }
 0x96f   :  { %v259_v11 = vsub.f32 1.5, %v258_v10 }
 0x971   :  { %v260_v12 = vmul.f32 %v996_v7, %v259_v11 }
 0x973   :  { %v264_v15 = vsel %vm263_vm15, %v996_v7, %v260_v12 }
 0x974   :  { %v265_v17 = vmul.f32 %v264_v15, %v244_v0 }
 0x976   :  { %v266_v18 = vmul.f32 %v265_v17, %v1149_v13 }
 0x978   :  { %v267_v19 = vadd.f32 %v266_v18, %v1151_v16 }
 0x97a   :  { %997 = vtanh.f32 %v267_v19 }
 0x980   :  { %v998_v20 = vpop.eup %997 }
 0x981   :  { %270 = vrot.lane.b32.xlu1 %v998_v20, %s1068_s30 }
 0x9f3   :  { %v271_v21 = vpop.permute.xlu1 %270 }
 0x9f4   :  { %v273_v22 = vmul.f32 %v271_v21, %v223_v53 }
 0x9f6   :  { %275 = vrot.lane.b32.xlu1 %v273_v22, %s1069_s4 }
 0xa68   :  { %v276_v23 = vpop.permute.xlu1 %275 }
 0xa69   :  { %943 = vst.msk [vmem:[%s1401_s3 + $0x8] sm:$0xff] %vm18_vm0, %v276_v23  ;;  %945 = vmatmul.msk.f32.vlgmr.msra.gmra.mxu2 %vm18_vm0, %v276_v23 }
 0xaec   :  { %v301_v24 = vpop.f32.mrf.mxu2 }
 0xaed   :  { %v302_v25 = vadd.f32 %v1102_v4, %v301_v24 }
 0xaef   :  { %v304_v26 = vsel %vm56_vm1, %v302_v25, 0.0 }
 0xaf0   :  { %305 = vadd.xlane.f32.xlu2 %v304_v26 }
 0xb63   :  { %v306_v27 = vpop.xlane.xlu2 %305 }
 0xb64   :  { %v307_v28 = vmul.f32 %v306_v27, %v1106_v14 }
 0xb66   :  { %v308_v30 = vsub.f32 %v302_v25, %v307_v28 }
 0xb68   :  { %v309_v31 = vmul.f32 %v308_v30, %v308_v30 }
 0xb6a   :  { %v310_v33 = vsel %vm56_vm1, %v309_v31, 0.0 }
 0xb6b   :  { %311 = vadd.xlane.f32.xlu1 %v310_v33 }
 0xbde   :  { %v312_v34 = vpop.xlane.xlu1 %311 }
 0xbdf   :  { %v313_v35 = vmul.f32 %v312_v34, %v1106_v14 }
 0xbe1   :  { %v314_v36 = vadd.f32 1e-05, %v313_v35 }
 0xbe3   :  { %999 = vrsqrt.f32 %v314_v36  ;;  %vm321_vm3 = vweird.f32 %v314_v36 }
 0xbe9   :  { %v1000_v37 = vpop.eup %999 }
 0xbea   :  { %v316_v38 = vmul.f32 %v1000_v37, %v314_v36  ;;  %vm322_vm2 = vweird.f32 %v1000_v37 }
 0xbeb   :  { %vm323_vm4 = vmor %vm321_vm3, %vm322_vm2 }
 0xbec   :  { %v317_v39 = vmul.f32 %v1000_v37, %v316_v38 }
 0xbee   :  { %v318_v40 = vmul.f32 0.5, %v317_v39 }
 0xbf0   :  { %v319_v41 = vsub.f32 1.5, %v318_v40 }
 0xbf2   :  { %v320_v42 = vmul.f32 %v1000_v37, %v319_v41 }
 0xbf4   :  { %v324_v43 = vsel %vm323_vm4, %v1000_v37, %v320_v42 }
 0xbf5   :  { %v325_v44 = vmul.f32 %v324_v43, %v308_v30 }
 0xbf7   :  { %v326_v45 = vmul.f32 %v1114_v29, %v325_v44 }
 0xbf9   :  { %v327_v47 = vadd.f32 %v1119_v32, %v326_v45 }
 0xbfb   :  { %v328_v49 = vadd.f32 %v944_v46, %v327_v47  ;;  %v947_v47 = vld [vmem:[%s1400_s0 + $0x18] sm:$0xff] }
 0xbfd   :  { %1001 = vtanh.f32 %v328_v49  ;;  %v329_v51 = vmul.f32 0.5, %v328_v49 }
 0xbff   :  { %1003 = vtanh.f32 %v329_v51 }
 0xc03   :  { %v1002_v50 = vpop.eup %1001 }
 0xc04   :  { %336 = vrot.lane.b32.xlu2 %v1002_v50, %s1064_s23 }
 0xc05   :  { %v1004_v52 = vpop.eup %1003 }
 0xc06   :  { %v331_v53 = vmul.f32 0.5, %v1004_v52 }
 0xc08   :  { %v332_v54 = vadd.f32 0.5, %v331_v53 }
 0xc0a   :  { %v334_v58 = vmul.f32 %v332_v54, %v1175_v59 }
 0xc5e   :  { %v337_v55 = vpop.permute.xlu2 %336 }
 0xc5f   :  { %v339_v56 = vmul.f32 %v337_v55, %v332_v54 }
 0xc61   :  { %341 = vrot.lane.b32.xlu0 %v339_v56, %s1065_s24 }
 0xcd3   :  { %v342_v60 = vpop.permute.xlu0 %341 }
 0xcd4   :  { %v1207_v61 = vadd.f32 %v342_v60, %v334_v58 }
 0xcd6   :  { %346 = vrot.lane.b32.xlu2 %v1207_v61, %s1066_s25 }
 0xd30   :  { %v347_v62 = vpop.permute.xlu2 %346 }
 0xd31   :  { %v349_v63 = vsel %vm18_vm0, %v347_v62, 0.0 }
 0xd32   :  { %350 = vadd.xlane.f32.xlu0 %v349_v63 }
 0xda5   :  { %v351_v0 = vpop.xlane.xlu0 %350 }
 0xda6   :  { %v352_v1 = vmul.f32 %v351_v0, %v1134_v57 }
 0xda8   :  { %v353_v2 = vsub.f32 %v1207_v61, %v352_v1 }
 0xdaa   :  { %v354_v48 = vmul.f32 %v353_v2, %v353_v2 }
 0xdac   :  { %356 = vrot.lane.b32.xlu2 %v354_v48, %s1066_s25 }
 0xe06   :  { %v357_v3 = vpop.permute.xlu2 %356 }
 0xe07   :  { %v359_v59 = vsel %vm18_vm0, %v357_v3, 0.0 }
 0xe08   :  { %360 = vadd.xlane.f32.xlu1 %v359_v59 }
 0xe7b   :  { %v361_v5 = vpop.xlane.xlu1 %360 }
 0xe7c   :  { %v362_v6 = vmul.f32 %v361_v5, %v1134_v57 }
 0xe7e   :  { %v363_v7 = vadd.f32 1e-05, %v362_v6 }
 0xe80   :  { %1005 = vrsqrt.f32 %v363_v7  ;;  %vm370_vm6 = vweird.f32 %v363_v7 }
 0xe86   :  { %v1006_v8 = vpop.eup %1005 }
 0xe87   :  { %v365_v9 = vmul.f32 %v1006_v8, %v363_v7  ;;  %vm371_vm5 = vweird.f32 %v1006_v8 }
 0xe88   :  { %vm372_vm7 = vmor %vm370_vm6, %vm371_vm5 }
 0xe89   :  { %v366_v10 = vmul.f32 %v1006_v8, %v365_v9 }
 0xe8b   :  { %v367_v11 = vmul.f32 0.5, %v366_v10 }
 0xe8d   :  { %v368_v12 = vsub.f32 1.5, %v367_v11 }
 0xe8f   :  { %v369_v15 = vmul.f32 %v1006_v8, %v368_v12 }
 0xe91   :  { %v373_v17 = vsel %vm372_vm7, %v1006_v8, %v369_v15 }
 0xe92   :  { %v374_v18 = vmul.f32 %v373_v17, %v353_v2 }
 0xe94   :  { %v375_v19 = vmul.f32 %v374_v18, %v1149_v13 }
 0xe96   :  { %v376_v20 = vadd.f32 %v375_v19, %v1151_v16 }
 0xe98   :  { %1007 = vtanh.f32 %v376_v20 }
 0xe9e   :  { %v1008_v21 = vpop.eup %1007 }
 0xe9f   :  { %379 = vrot.lane.b32.xlu2 %v1008_v21, %s1068_s30 }
 0xef9   :  { %v380_v22 = vpop.permute.xlu2 %379 }
 0xefa   :  { %v382_v23 = vmul.f32 %v380_v22, %v332_v54 }
 0xefc   :  { %384 = vrot.lane.b32.xlu1 %v382_v23, %s1069_s4 }
 0xf6e   :  { %v385_v24 = vpop.permute.xlu1 %384 }
 0xf6f   :  { %946 = vst.msk [vmem:[%s1401_s3 + $0x10] sm:$0xff] %vm18_vm0, %v385_v24  ;;  %948 = vmatmul.msk.f32.vlgmr.msra.gmra.mxu3 %vm18_vm0, %v385_v24 }
 0xff2   :  { %v410_v25 = vpop.f32.mrf.mxu3 }
 0xff3   :  { %v411_v26 = vadd.f32 %v1102_v4, %v410_v25 }
 0xff5   :  { %v413_v27 = vsel %vm56_vm1, %v411_v26, 0.0 }
 0xff6   :  { %414 = vadd.xlane.f32.xlu2 %v413_v27 }
0x1069   :  { %v415_v28 = vpop.xlane.xlu2 %414 }
0x106a   :  { %v416_v30 = vmul.f32 %v415_v28, %v1106_v14 }
0x106c   :  { %v417_v31 = vsub.f32 %v411_v26, %v416_v30 }
0x106e   :  { %v418_v33 = vmul.f32 %v417_v31, %v417_v31 }
0x1070   :  { %v419_v34 = vsel %vm56_vm1, %v418_v33, 0.0 }
0x1071   :  { %420 = vadd.xlane.f32.xlu1 %v419_v34 }
0x10e4   :  { %v421_v35 = vpop.xlane.xlu1 %420 }
0x10e5   :  { %v422_v36 = vmul.f32 %v421_v35, %v1106_v14 }
0x10e7   :  { %v423_v37 = vadd.f32 1e-05, %v422_v36 }
0x10e9   :  { %1009 = vrsqrt.f32 %v423_v37  ;;  %vm430_vm9 = vweird.f32 %v423_v37 }
0x10ef   :  { %v1010_v38 = vpop.eup %1009 }
0x10f0   :  { %v425_v39 = vmul.f32 %v1010_v38, %v423_v37  ;;  %vm431_vm8 = vweird.f32 %v1010_v38 }
0x10f1   :  { %vm432_vm10 = vmor %vm430_vm9, %vm431_vm8 }
0x10f2   :  { %v426_v40 = vmul.f32 %v1010_v38, %v425_v39 }
0x10f4   :  { %v427_v41 = vmul.f32 0.5, %v426_v40 }
0x10f6   :  { %v428_v42 = vsub.f32 1.5, %v427_v41 }
0x10f8   :  { %v429_v43 = vmul.f32 %v1010_v38, %v428_v42 }
0x10fa   :  { %v433_v44 = vsel %vm432_vm10, %v1010_v38, %v429_v43 }
0x10fb   :  { %v434_v45 = vmul.f32 %v433_v44, %v417_v31 }
0x10fd   :  { %v435_v46 = vmul.f32 %v1114_v29, %v434_v45 }
0x10ff   :  { %v436_v49 = vadd.f32 %v1119_v32, %v435_v46 }
0x1101   :  { %v437_v50 = vadd.f32 %v947_v47, %v436_v49  ;;  %v950_v49 = vld [vmem:[%s1400_s0 + $0x20] sm:$0xff] }
0x1103   :  { %1011 = vtanh.f32 %v437_v50  ;;  %v438_v52 = vmul.f32 0.5, %v437_v50 }
0x1105   :  { %1013 = vtanh.f32 %v438_v52 }
0x1109   :  { %v1012_v51 = vpop.eup %1011 }
0x110a   :  { %445 = vrot.lane.b32.xlu0 %v1012_v51, %s1064_s23 }
0x110b   :  { %v1014_v53 = vpop.eup %1013 }
0x110c   :  { %v440_v54 = vmul.f32 0.5, %v1014_v53 }
0x110e   :  { %v441_v55 = vadd.f32 0.5, %v440_v54 }
0x1110   :  { %v443_v60 = vmul.f32 %v441_v55, %v1207_v61 }
0x117c   :  { %v446_v56 = vpop.permute.xlu0 %445 }
0x117d   :  { %v448_v58 = vmul.f32 %v446_v56, %v441_v55 }
0x117f   :  { %450 = vrot.lane.b32.xlu2 %v448_v58, %s1065_s24 }
0x11d9   :  { %v451_v62 = vpop.permute.xlu2 %450 }
0x11da   :  { %v1239_v63 = vadd.f32 %v451_v62, %v443_v60 }
0x11dc   :  { %455 = vrot.lane.b32.xlu0 %v1239_v63, %s1066_s25 }
0x124e   :  { %v456_v0 = vpop.permute.xlu0 %455 }
0x124f   :  { %v458_v1 = vsel %vm18_vm0, %v456_v0, 0.0 }
0x1250   :  { %459 = vadd.xlane.f32.xlu0 %v458_v1 }
0x12c3   :  { %v460_v2 = vpop.xlane.xlu0 %459 }
0x12c4   :  { %v461_v48 = vmul.f32 %v460_v2, %v1134_v57 }
0x12c6   :  { %v462_v3 = vsub.f32 %v1239_v63, %v461_v48 }
0x12c8   :  { %v463_v59 = vmul.f32 %v462_v3, %v462_v3 }
0x12ca   :  { %465 = vrot.lane.b32.xlu1 %v463_v59, %s1066_s25 }
0x133c   :  { %v466_v5 = vpop.permute.xlu1 %465 }
0x133d   :  { %v468_v61 = vsel %vm18_vm0, %v466_v5, 0.0 }
0x133e   :  { %469 = vadd.xlane.f32.xlu2 %v468_v61 }
0x13b1   :  { %v470_v6 = vpop.xlane.xlu2 %469 }
0x13b2   :  { %v471_v7 = vmul.f32 %v470_v6, %v1134_v57 }
0x13b4   :  { %v472_v8 = vadd.f32 1e-05, %v471_v7 }
0x13b6   :  { %1015 = vrsqrt.f32 %v472_v8  ;;  %vm479_vm12 = vweird.f32 %v472_v8 }
0x13bc   :  { %v1016_v9 = vpop.eup %1015 }
0x13bd   :  { %v474_v10 = vmul.f32 %v1016_v9, %v472_v8  ;;  %vm480_vm11 = vweird.f32 %v1016_v9 }
0x13be   :  { %vm481_vm13 = vmor %vm479_vm12, %vm480_vm11 }
0x13bf   :  { %v475_v11 = vmul.f32 %v1016_v9, %v474_v10 }
0x13c1   :  { %v476_v12 = vmul.f32 0.5, %v475_v11 }
0x13c3   :  { %v477_v15 = vsub.f32 1.5, %v476_v12 }
0x13c5   :  { %v478_v17 = vmul.f32 %v1016_v9, %v477_v15 }
0x13c7   :  { %v482_v18 = vsel %vm481_vm13, %v1016_v9, %v478_v17 }
0x13c8   :  { %v483_v19 = vmul.f32 %v482_v18, %v462_v3 }
0x13ca   :  { %v484_v20 = vmul.f32 %v483_v19, %v1149_v13 }
0x13cc   :  { %v485_v21 = vadd.f32 %v484_v20, %v1151_v16 }
0x13ce   :  { %1017 = vtanh.f32 %v485_v21 }
0x13d4   :  { %v1018_v22 = vpop.eup %1017 }
0x13d5   :  { %488 = vrot.lane.b32.xlu1 %v1018_v22, %s1068_s30 }
0x1447   :  { %v489_v23 = vpop.permute.xlu1 %488 }
0x1448   :  { %v491_v24 = vmul.f32 %v489_v23, %v441_v55 }
0x144a   :  { %493 = vrot.lane.b32.xlu0 %v491_v24, %s1069_s4 }
0x14bc   :  { %v494_v25 = vpop.permute.xlu0 %493 }
0x14bd   :  { %949 = vst.msk [vmem:[%s1401_s3 + $0x18] sm:$0xff] %vm18_vm0, %v494_v25  ;;  %951 = vmatmul.msk.f32.vlgmr.msrb.gmra.mxu0 %vm18_vm0, %v494_v25 }
0x153a   :  { %v519_v26 = vpop.f32.mrf.mxu0 }
0x153b   :  { %v520_v27 = vadd.f32 %v1102_v4, %v519_v26 }
0x153d   :  { %v522_v28 = vsel %vm56_vm1, %v520_v27, 0.0 }
0x153e   :  { %523 = vadd.xlane.f32.xlu1 %v522_v28 }
0x15b1   :  { %v524_v30 = vpop.xlane.xlu1 %523 }
0x15b2   :  { %v525_v31 = vmul.f32 %v524_v30, %v1106_v14 }
0x15b4   :  { %v526_v33 = vsub.f32 %v520_v27, %v525_v31 }
0x15b6   :  { %v527_v34 = vmul.f32 %v526_v33, %v526_v33 }
0x15b8   :  { %v528_v35 = vsel %vm56_vm1, %v527_v34, 0.0 }
0x15b9   :  { %529 = vadd.xlane.f32.xlu2 %v528_v35 }
0x162c   :  { %v530_v36 = vpop.xlane.xlu2 %529 }
0x162d   :  { %v531_v37 = vmul.f32 %v530_v36, %v1106_v14 }
0x162f   :  { %v532_v38 = vadd.f32 1e-05, %v531_v37 }
0x1631   :  { %1019 = vrsqrt.f32 %v532_v38  ;;  %vm539_vm15 = vweird.f32 %v532_v38 }
0x1637   :  { %v1020_v39 = vpop.eup %1019 }
0x1638   :  { %v534_v40 = vmul.f32 %v1020_v39, %v532_v38  ;;  %vm540_vm14 = vweird.f32 %v1020_v39 }
0x1639   :  { %vm541_vm2 = vmor %vm539_vm15, %vm540_vm14 }
0x163a   :  { %v535_v41 = vmul.f32 %v1020_v39, %v534_v40 }
0x163c   :  { %v536_v42 = vmul.f32 0.5, %v535_v41 }
0x163e   :  { %v537_v43 = vsub.f32 1.5, %v536_v42 }
0x1640   :  { %v538_v44 = vmul.f32 %v1020_v39, %v537_v43 }
0x1642   :  { %v542_v45 = vsel %vm541_vm2, %v1020_v39, %v538_v44 }
0x1643   :  { %v543_v46 = vmul.f32 %v542_v45, %v526_v33 }
0x1645   :  { %v544_v47 = vmul.f32 %v1114_v29, %v543_v46 }
0x1647   :  { %v545_v50 = vadd.f32 %v1119_v32, %v544_v47 }
0x1649   :  { %v546_v51 = vadd.f32 %v950_v49, %v545_v50  ;;  %v953_v49 = vld [vmem:[%s1400_s0 + $0x28] sm:$0xff] }
0x164b   :  { %1021 = vtanh.f32 %v546_v51  ;;  %v547_v53 = vmul.f32 0.5, %v546_v51 }
0x164d   :  { %1023 = vtanh.f32 %v547_v53 }
0x1651   :  { %v1022_v52 = vpop.eup %1021 }
0x1652   :  { %554 = vrot.lane.b32.xlu0 %v1022_v52, %s1064_s23 }
0x1653   :  { %v1024_v54 = vpop.eup %1023 }
0x1654   :  { %v549_v55 = vmul.f32 0.5, %v1024_v54 }
0x1656   :  { %v550_v56 = vadd.f32 0.5, %v549_v55 }
0x1658   :  { %v552_v62 = vmul.f32 %v550_v56, %v1239_v63 }
0x16c4   :  { %v555_v58 = vpop.permute.xlu0 %554 }
0x16c5   :  { %v557_v60 = vmul.f32 %v555_v58, %v550_v56 }
0x16c7   :  { %559 = vrot.lane.b32.xlu2 %v557_v60, %s1065_s24 }
0x1721   :  { %v560_v0 = vpop.permute.xlu2 %559 }
0x1722   :  { %v1271_v1 = vadd.f32 %v560_v0, %v552_v62 }
0x1724   :  { %564 = vrot.lane.b32.xlu0 %v1271_v1, %s1066_s25 }
0x1796   :  { %v565_v2 = vpop.permute.xlu0 %564 }
0x1797   :  { %v567_v48 = vsel %vm18_vm0, %v565_v2, 0.0 }
0x1798   :  { %568 = vadd.xlane.f32.xlu0 %v567_v48 }
0x180b   :  { %v569_v3 = vpop.xlane.xlu0 %568 }
0x180c   :  { %v570_v59 = vmul.f32 %v569_v3, %v1134_v57 }
0x180e   :  { %v571_v5 = vsub.f32 %v1271_v1, %v570_v59 }
0x1810   :  { %v572_v61 = vmul.f32 %v571_v5, %v571_v5 }
0x1812   :  { %574 = vrot.lane.b32.xlu1 %v572_v61, %s1066_s25 }
0x1884   :  { %v575_v6 = vpop.permute.xlu1 %574 }
0x1885   :  { %v577_v63 = vsel %vm18_vm0, %v575_v6, 0.0 }
0x1886   :  { %578 = vadd.xlane.f32.xlu2 %v577_v63 }
0x18f9   :  { %v579_v7 = vpop.xlane.xlu2 %578 }
0x18fa   :  { %v580_v8 = vmul.f32 %v579_v7, %v1134_v57 }
0x18fc   :  { %v581_v9 = vadd.f32 1e-05, %v580_v8 }
0x18fe   :  { %1025 = vrsqrt.f32 %v581_v9  ;;  %vm588_vm4 = vweird.f32 %v581_v9 }
0x1904   :  { %v1026_v10 = vpop.eup %1025 }
0x1905   :  { %v583_v11 = vmul.f32 %v1026_v10, %v581_v9  ;;  %vm589_vm3 = vweird.f32 %v1026_v10 }
0x1906   :  { %vm590_vm5 = vmor %vm588_vm4, %vm589_vm3 }
0x1907   :  { %v584_v12 = vmul.f32 %v1026_v10, %v583_v11 }
0x1909   :  { %v585_v15 = vmul.f32 0.5, %v584_v12 }
0x190b   :  { %v586_v17 = vsub.f32 1.5, %v585_v15 }
0x190d   :  { %v587_v18 = vmul.f32 %v1026_v10, %v586_v17 }
0x190f   :  { %v591_v19 = vsel %vm590_vm5, %v1026_v10, %v587_v18 }
0x1910   :  { %v592_v20 = vmul.f32 %v591_v19, %v571_v5 }
0x1912   :  { %v593_v21 = vmul.f32 %v592_v20, %v1149_v13 }
0x1914   :  { %v594_v22 = vadd.f32 %v593_v21, %v1151_v16 }
0x1916   :  { %1027 = vtanh.f32 %v594_v22 }
0x191c   :  { %v1028_v23 = vpop.eup %1027 }
0x191d   :  { %597 = vrot.lane.b32.xlu1 %v1028_v23, %s1068_s30 }
0x198f   :  { %v598_v24 = vpop.permute.xlu1 %597 }
0x1990   :  { %v600_v25 = vmul.f32 %v598_v24, %v550_v56 }
0x1992   :  { %602 = vrot.lane.b32.xlu1 %v600_v25, %s1069_s4 }
0x1a04   :  { %v603_v26 = vpop.permute.xlu1 %602 }
0x1a05   :  { %952 = vst.msk [vmem:[%s1401_s3 + $0x20] sm:$0xff] %vm18_vm0, %v603_v26  ;;  %954 = vmatmul.msk.f32.vlgmr.msrb.gmra.mxu1 %vm18_vm0, %v603_v26  ;;  %v1325_v26 = vld [vmem:[%s1399_s2] ss:$0 sm:$0xff] }
0x1a82   :  { %v628_v27 = vpop.f32.mrf.mxu1 }
0x1a83   :  { %v629_v28 = vadd.f32 %v1102_v4, %v628_v27 }
0x1a85   :  { %v631_v30 = vsel %vm56_vm1, %v629_v28, 0.0 }
0x1a86   :  { %632 = vadd.xlane.f32.xlu0 %v631_v30 }
0x1af9   :  { %v633_v31 = vpop.xlane.xlu0 %632 }
0x1afa   :  { %v634_v33 = vmul.f32 %v633_v31, %v1106_v14 }
0x1afc   :  { %v635_v34 = vsub.f32 %v629_v28, %v634_v33 }
0x1afe   :  { %v636_v35 = vmul.f32 %v635_v34, %v635_v34 }
0x1b00   :  { %v637_v36 = vsel %vm56_vm1, %v636_v35, 0.0 }
0x1b01   :  { %638 = vadd.xlane.f32.xlu1 %v637_v36 }
0x1b74   :  { %v639_v37 = vpop.xlane.xlu1 %638 }
0x1b75   :  { %v640_v38 = vmul.f32 %v639_v37, %v1106_v14 }
0x1b77   :  { %v641_v39 = vadd.f32 1e-05, %v640_v38 }
0x1b79   :  { %1029 = vrsqrt.f32 %v641_v39  ;;  %vm648_vm7 = vweird.f32 %v641_v39 }
0x1b7f   :  { %v1030_v40 = vpop.eup %1029 }
0x1b80   :  { %v643_v41 = vmul.f32 %v1030_v40, %v641_v39  ;;  %vm649_vm6 = vweird.f32 %v1030_v40 }
0x1b81   :  { %vm650_vm8 = vmor %vm648_vm7, %vm649_vm6 }
0x1b82   :  { %v644_v42 = vmul.f32 %v1030_v40, %v643_v41 }
0x1b84   :  { %v645_v4 = vmul.f32 0.5, %v644_v42 }
0x1b86   :  { %v646_v43 = vsub.f32 1.5, %v645_v4 }
0x1b88   :  { %v647_v44 = vmul.f32 %v1030_v40, %v646_v43 }
0x1b8a   :  { %v651_v45 = vsel %vm650_vm8, %v1030_v40, %v647_v44 }
0x1b8b   :  { %v652_v46 = vmul.f32 %v651_v45, %v635_v34 }
0x1b8d   :  { %v653_v47 = vmul.f32 %v1114_v29, %v652_v46  ;;  %v1335_v46 = vld [vmem:[%s1399_s2 + $0x1] ss:$0 sm:$0xff] }
0x1b8f   :  { %v654_v50 = vadd.f32 %v1119_v32, %v653_v47 }
0x1b91   :  { %v655_v51 = vadd.f32 %v953_v49, %v654_v50  ;;  %v956_v49 = vld [vmem:[%s1400_s0 + $0x30] sm:$0xff]  ;;  %v1344_v50 = vld [vmem:[%s1399_s2 + $0x2] ss:$0 sm:$0xff] }
0x1b93   :  { %1031 = vtanh.f32 %v655_v51  ;;  %v656_v53 = vmul.f32 0.5, %v655_v51 }
0x1b95   :  { %1033 = vtanh.f32 %v656_v53 }
0x1b99   :  { %v1032_v52 = vpop.eup %1031 }
0x1b9a   :  { %663 = vrot.lane.b32.xlu2 %v1032_v52, %s1064_s23 }
0x1b9b   :  { %v1034_v54 = vpop.eup %1033 }
0x1b9c   :  { %v658_v55 = vmul.f32 0.5, %v1034_v54 }
0x1b9e   :  { %v659_v56 = vadd.f32 0.5, %v658_v55 }
0x1ba0   :  { %v661_v29 = vmul.f32 %v659_v56, %v1271_v1 }
0x1bf4   :  { %v664_v58 = vpop.permute.xlu2 %663 }
0x1bf5   :  { %v666_v60 = vmul.f32 %v664_v58, %v659_v56 }
0x1bf7   :  { %668 = vrot.lane.b32.xlu0 %v666_v60, %s1065_s24 }
0x1c69   :  { %v669_v62 = vpop.permute.xlu0 %668 }
0x1c6a   :  { %v1303_v0 = vadd.f32 %v669_v62, %v661_v29 }
0x1c6c   :  { %673 = vrot.lane.b32.xlu0 %v1303_v0, %s1066_s25 }
0x1cde   :  { %v674_v32 = vpop.permute.xlu0 %673 }
0x1cdf   :  { %v676_v2 = vsel %vm18_vm0, %v674_v32, 0.0 }
0x1ce0   :  { %677 = vadd.xlane.f32.xlu2 %v676_v2 }
0x1d53   :  { %v678_v48 = vpop.xlane.xlu2 %677 }
0x1d54   :  { %v679_v3 = vmul.f32 %v678_v48, %v1134_v57 }
0x1d56   :  { %v680_v59 = vsub.f32 %v1303_v0, %v679_v3 }
0x1d58   :  { %v681_v5 = vmul.f32 %v680_v59, %v680_v59 }
0x1d5a   :  { %683 = vrot.lane.b32.xlu0 %v681_v5, %s1066_s25 }
0x1dcc   :  { %v684_v61 = vpop.permute.xlu0 %683 }
0x1dcd   :  { %v686_v1 = vsel %vm18_vm0, %v684_v61, 0.0 }
0x1dce   :  { %687 = vadd.xlane.f32.xlu0 %v686_v1 }
0x1e41   :  { %v688_v6 = vpop.xlane.xlu0 %687 }
0x1e42   :  { %v689_v63 = vmul.f32 %v688_v6, %v1134_v57 }
0x1e44   :  { %v690_v7 = vadd.f32 1e-05, %v689_v63 }
0x1e46   :  { %1035 = vrsqrt.f32 %v690_v7  ;;  %vm697_vm10 = vweird.f32 %v690_v7 }
0x1e4c   :  { %v1036_v8 = vpop.eup %1035 }
0x1e4d   :  { %v692_v9 = vmul.f32 %v1036_v8, %v690_v7  ;;  %vm698_vm9 = vweird.f32 %v1036_v8 }
0x1e4e   :  { %vm699_vm11 = vmor %vm697_vm10, %vm698_vm9 }
0x1e4f   :  { %v693_v10 = vmul.f32 %v1036_v8, %v692_v9 }
0x1e51   :  { %v694_v11 = vmul.f32 0.5, %v693_v10 }
0x1e53   :  { %v695_v12 = vsub.f32 1.5, %v694_v11 }
0x1e55   :  { %v696_v15 = vmul.f32 %v1036_v8, %v695_v12 }
0x1e57   :  { %v700_v17 = vsel %vm699_vm11, %v1036_v8, %v696_v15 }
0x1e58   :  { %v701_v18 = vmul.f32 %v700_v17, %v680_v59 }
0x1e5a   :  { %v702_v19 = vmul.f32 %v701_v18, %v1149_v13 }
0x1e5c   :  { %v703_v20 = vadd.f32 %v702_v19, %v1151_v16 }
0x1e5e   :  { %1037 = vtanh.f32 %v703_v20 }
0x1e64   :  { %v1038_v21 = vpop.eup %1037 }
0x1e65   :  { %706 = vrot.lane.b32.xlu1 %v1038_v21, %s1068_s30 }
0x1ed7   :  { %v707_v22 = vpop.permute.xlu1 %706 }
0x1ed8   :  { %v709_v23 = vmul.f32 %v707_v22, %v659_v56 }
0x1eda   :  { %711 = vrot.lane.b32.xlu2 %v709_v23, %s1069_s4 }
0x1f34   :  { %v712_v24 = vpop.permute.xlu2 %711 }
0x1f35   :  { %955 = vst.msk [vmem:[%s1401_s3 + $0x28] sm:$0xff] %vm18_vm0, %v712_v24  ;;  %957 = vmatmul.msk.f32.vlgmr.msrb.gmra.mxu2 %vm18_vm0, %v712_v24 }
0x1fb8   :  { %v737_v25 = vpop.f32.mrf.mxu2 }
0x1fb9   :  { %v738_v27 = vadd.f32 %v1325_v26, %v737_v25 }
0x1fbb   :  { %v740_v28 = vsel %vm56_vm1, %v738_v27, 0.0 }
0x1fbc   :  { %741 = vadd.xlane.f32.xlu1 %v740_v28 }
0x202f   :  { %v742_v30 = vpop.xlane.xlu1 %741 }
0x2030   :  { %v743_v31 = vmul.f32 %v742_v30, %v1106_v14 }
0x2032   :  { %v744_v33 = vsub.f32 %v738_v27, %v743_v31 }
0x2034   :  { %v745_v34 = vmul.f32 %v744_v33, %v744_v33 }
0x2036   :  { %v746_v35 = vsel %vm56_vm1, %v745_v34, 0.0 }
0x2037   :  { %747 = vadd.xlane.f32.xlu0 %v746_v35 }
0x20aa   :  { %v748_v36 = vpop.xlane.xlu0 %747 }
0x20ab   :  { %v749_v37 = vmul.f32 %v748_v36, %v1106_v14 }
0x20ad   :  { %v750_v38 = vadd.f32 1e-05, %v749_v37 }
0x20af   :  { %1039 = vrsqrt.f32 %v750_v38  ;;  %vm757_vm13 = vweird.f32 %v750_v38 }
0x20b5   :  { %v1040_v39 = vpop.eup %1039 }
0x20b6   :  { %v752_v40 = vmul.f32 %v1040_v39, %v750_v38  ;;  %vm758_vm12 = vweird.f32 %v1040_v39 }
0x20b7   :  { %vm759_vm14 = vmor %vm757_vm13, %vm758_vm12 }
0x20b8   :  { %v753_v41 = vmul.f32 %v1040_v39, %v752_v40 }
0x20ba   :  { %v754_v42 = vmul.f32 0.5, %v753_v41 }
0x20bc   :  { %v755_v4 = vsub.f32 1.5, %v754_v42 }
0x20be   :  { %v756_v43 = vmul.f32 %v1040_v39, %v755_v4 }
0x20c0   :  { %v760_v44 = vsel %vm759_vm14, %v1040_v39, %v756_v43 }
0x20c1   :  { %v761_v45 = vmul.f32 %v760_v44, %v744_v33 }
0x20c3   :  { %v762_v47 = vmul.f32 %v1335_v46, %v761_v45 }
0x20c5   :  { %v763_v51 = vadd.f32 %v1344_v50, %v762_v47 }
0x20c7   :  { %v764_v52 = vadd.f32 %v956_v49, %v763_v51  ;;  %v959_v49 = vld [vmem:[%s1400_s0 + $0x38] sm:$0xff] }
0x20c9   :  { %1041 = vtanh.f32 %v764_v52  ;;  %v765_v54 = vmul.f32 0.5, %v764_v52 }
0x20cb   :  { %1043 = vtanh.f32 %v765_v54 }
0x20cf   :  { %v1042_v53 = vpop.eup %1041 }
0x20d0   :  { %772 = vrot.lane.b32.xlu0 %v1042_v53, %s1064_s23 }
0x20d1   :  { %v1044_v55 = vpop.eup %1043 }
0x20d2   :  { %v767_v56 = vmul.f32 0.5, %v1044_v55 }
0x20d4   :  { %v768_v58 = vadd.f32 0.5, %v767_v56 }
0x20d6   :  { %v770_v62 = vmul.f32 %v768_v58, %v1303_v0 }
0x2142   :  { %v773_v60 = vpop.permute.xlu0 %772 }
0x2143   :  { %v775_v29 = vmul.f32 %v773_v60, %v768_v58 }
0x2145   :  { %777 = vrot.lane.b32.xlu2 %v775_v29, %s1065_s24 }
0x219f   :  { %v778_v32 = vpop.permute.xlu2 %777 }
0x21a0   :  { %v1350_v2 = vadd.f32 %v778_v32, %v770_v62 }
0x21a2   :  { %782 = vrot.lane.b32.xlu2 %v1350_v2, %s1066_s25 }
0x21fc   :  { %v783_v48 = vpop.permute.xlu2 %782 }
0x21fd   :  { %v785_v3 = vsel %vm18_vm0, %v783_v48, 0.0 }
0x21fe   :  { %786 = vadd.xlane.f32.xlu2 %v785_v3 }
0x2271   :  { %v787_v59 = vpop.xlane.xlu2 %786 }
0x2272   :  { %v788_v5 = vmul.f32 %v787_v59, %v1134_v57 }
0x2274   :  { %v789_v61 = vsub.f32 %v1350_v2, %v788_v5 }
0x2276   :  { %v790_v1 = vmul.f32 %v789_v61, %v789_v61 }
0x2278   :  { %792 = vrot.lane.b32.xlu0 %v790_v1, %s1066_s25 }
0x22ea   :  { %v793_v6 = vpop.permute.xlu0 %792 }
0x22eb   :  { %v795_v0 = vsel %vm18_vm0, %v793_v6, 0.0 }
0x22ec   :  { %796 = vadd.xlane.f32.xlu1 %v795_v0 }
0x235f   :  { %v797_v63 = vpop.xlane.xlu1 %796 }
0x2360   :  { %v798_v7 = vmul.f32 %v797_v63, %v1134_v57 }
0x2362   :  { %v799_v8 = vadd.f32 1e-05, %v798_v7 }
0x2364   :  { %1045 = vrsqrt.f32 %v799_v8  ;;  %vm806_vm2 = vweird.f32 %v799_v8 }
0x236a   :  { %v1046_v9 = vpop.eup %1045 }
0x236b   :  { %v801_v10 = vmul.f32 %v1046_v9, %v799_v8  ;;  %vm807_vm15 = vweird.f32 %v1046_v9 }
0x236c   :  { %vm808_vm3 = vmor %vm806_vm2, %vm807_vm15 }
0x236d   :  { %v802_v11 = vmul.f32 %v1046_v9, %v801_v10 }
0x236f   :  { %v803_v12 = vmul.f32 0.5, %v802_v11 }
0x2371   :  { %v804_v15 = vsub.f32 1.5, %v803_v12 }
0x2373   :  { %v805_v17 = vmul.f32 %v1046_v9, %v804_v15 }
0x2375   :  { %v809_v18 = vsel %vm808_vm3, %v1046_v9, %v805_v17 }
0x2376   :  { %v810_v19 = vmul.f32 %v809_v18, %v789_v61 }
0x2378   :  { %v811_v20 = vmul.f32 %v810_v19, %v1149_v13 }
0x237a   :  { %v812_v21 = vadd.f32 %v811_v20, %v1151_v16 }
0x237c   :  { %1047 = vtanh.f32 %v812_v21 }
0x2382   :  { %v1048_v22 = vpop.eup %1047 }
0x2383   :  { %815 = vrot.lane.b32.xlu0 %v1048_v22, %s1068_s30 }
0x23f5   :  { %v816_v23 = vpop.permute.xlu0 %815 }
0x23f6   :  { %v818_v24 = vmul.f32 %v816_v23, %v768_v58 }
0x23f8   :  { %820 = vrot.lane.b32.xlu1 %v818_v24, %s1069_s4 }
0x246a   :  { %v821_v25 = vpop.permute.xlu1 %820 }
0x246b   :  { %958 = vst.msk [vmem:[%s1401_s3 + $0x30] sm:$0xff] %vm18_vm0, %v821_v25  ;;  %960 = vmatmul.msk.f32.vlgmr.msrb.gmra.mxu3 %vm18_vm0, %v821_v25 }
0x24ee   :  { %v846_v27 = vpop.f32.mrf.mxu3 }
0x24ef   :  { %v847_v28 = vadd.f32 %v1325_v26, %v846_v27 }
0x24f1   :  { %v849_v30 = vsel %vm56_vm1, %v847_v28, 0.0 }
0x24f2   :  { %850 = vadd.xlane.f32.xlu0 %v849_v30 }
0x2565   :  { %v851_v31 = vpop.xlane.xlu0 %850 }
0x2566   :  { %v852_v33 = vmul.f32 %v851_v31, %v1106_v14 }
0x2568   :  { %v853_v34 = vsub.f32 %v847_v28, %v852_v33 }
0x256a   :  { %v854_v35 = vmul.f32 %v853_v34, %v853_v34 }
0x256c   :  { %v855_v36 = vsel %vm56_vm1, %v854_v35, 0.0 }
0x256d   :  { %856 = vadd.xlane.f32.xlu1 %v855_v36 }
0x25e0   :  { %v857_v37 = vpop.xlane.xlu1 %856 }
0x25e1   :  { %v858_v38 = vmul.f32 %v857_v37, %v1106_v14 }
0x25e3   :  { %v859_v39 = vadd.f32 1e-05, %v858_v38 }
0x25e5   :  { %1049 = vrsqrt.f32 %v859_v39  ;;  %vm866_vm5 = vweird.f32 %v859_v39 }
0x25eb   :  { %v1050_v40 = vpop.eup %1049 }
0x25ec   :  { %v861_v41 = vmul.f32 %v1050_v40, %v859_v39  ;;  %vm867_vm4 = vweird.f32 %v1050_v40 }
0x25ed   :  { %vm868_vm6 = vmor %vm866_vm5, %vm867_vm4 }
0x25ee   :  { %v862_v42 = vmul.f32 %v1050_v40, %v861_v41 }
0x25f0   :  { %v863_v26 = vmul.f32 0.5, %v862_v42 }
0x25f2   :  { %v864_v4 = vsub.f32 1.5, %v863_v26 }
0x25f4   :  { %v865_v43 = vmul.f32 %v1050_v40, %v864_v4 }
0x25f6   :  { %v869_v44 = vsel %vm868_vm6, %v1050_v40, %v865_v43 }
0x25f7   :  { %v870_v45 = vmul.f32 %v869_v44, %v853_v34 }
0x25f9   :  { %v871_v47 = vmul.f32 %v1335_v46, %v870_v45 }
0x25fb   :  { %v872_v14 = vadd.f32 %v1344_v50, %v871_v47 }
0x25fd   :  { %v873_v51 = vadd.f32 %v959_v49, %v872_v14 }
0x25ff   :  { %1051 = vtanh.f32 %v873_v51  ;;  %v874_v53 = vmul.f32 0.5, %v873_v51 }
0x2601   :  { %1053 = vtanh.f32 %v874_v53 }
0x2605   :  { %v1052_v52 = vpop.eup %1051 }
0x2606   :  { %881 = vrot.lane.b32.xlu2 %v1052_v52, %s1064_s23 }
0x2607   :  { %v1054_v54 = vpop.eup %1053 }
0x2608   :  { %v876_v55 = vmul.f32 0.5, %v1054_v54 }
0x260a   :  { %v877_v56 = vadd.f32 0.5, %v876_v55 }
0x260c   :  { %v879_v46 = vmul.f32 %v877_v56, %v1350_v2 }
0x2660   :  { %v882_v58 = vpop.permute.xlu2 %881 }
0x2661   :  { %v884_v60 = vmul.f32 %v882_v58, %v877_v56 }
0x2663   :  { %886 = vrot.lane.b32.xlu0 %v884_v60, %s1065_s24 }
0x26d5   :  { %v887_v29 = vpop.permute.xlu0 %886 }
0x26d6   :  { %v889_v62 = vadd.f32 %v887_v29, %v879_v46 }
0x26d8   :  { %891 = vrot.lane.b32.xlu2 %v889_v62, %s1066_s25 }
0x2732   :  { %v892_v50 = vpop.permute.xlu2 %891 }
0x2733   :  { %935 = vst.msk [vmem:[#allocation3] sm:$0xff] %vm18_vm0, %v892_v50  ;;  %v894_v32 = vsel %vm18_vm0, %v892_v50, 0.0 }
0x2734   :  { %895 = vadd.xlane.f32.xlu2 %v894_v32 }
0x27a7   :  { %v896_v48 = vpop.xlane.xlu2 %895 }
0x27a8   :  { %v897_v3 = vmul.f32 %v896_v48, %v1134_v57 }
0x27aa   :  { %v898_v59 = vsub.f32 %v889_v62, %v897_v3 }
0x27ac   :  { %v899_v5 = vmul.f32 %v898_v59, %v898_v59 }
0x27ae   :  { %901 = vrot.lane.b32.xlu1 %v899_v5, %s1066_s25 }
0x2820   :  { %v902_v61 = vpop.permute.xlu1 %901 }
0x2821   :  { %v904_v2 = vsel %vm18_vm0, %v902_v61, 0.0 }
0x2822   :  { %905 = vadd.xlane.f32.xlu0 %v904_v2 }
0x2895   :  { %v906_v1 = vpop.xlane.xlu0 %905 }
0x2896   :  { %v907_v6 = vmul.f32 %v906_v1, %v1134_v57 }
0x2898   :  { %v908_v0 = vadd.f32 1e-05, %v907_v6 }
0x289a   :  { %1055 = vrsqrt.f32 %v908_v0  ;;  %vm915_vm7 = vweird.f32 %v908_v0 }
0x28a0   :  { %v1056_v63 = vpop.eup %1055 }
0x28a1   :  { %v910_v7 = vmul.f32 %v1056_v63, %v908_v0  ;;  %vm916_vm1 = vweird.f32 %v1056_v63 }
0x28a2   :  { %vm917_vm8 = vmor %vm915_vm7, %vm916_vm1 }
0x28a3   :  { %v911_v8 = vmul.f32 %v1056_v63, %v910_v7 }
0x28a5   :  { %v912_v9 = vmul.f32 0.5, %v911_v8 }
0x28a7   :  { %v913_v10 = vsub.f32 1.5, %v912_v9 }
0x28a9   :  { %v914_v11 = vmul.f32 %v1056_v63, %v913_v10 }
0x28ab   :  { %v918_v12 = vsel %vm917_vm8, %v1056_v63, %v914_v11 }
0x28ac   :  { %v919_v15 = vmul.f32 %v918_v12, %v898_v59 }
0x28ae   :  { %v920_v17 = vmul.f32 %v919_v15, %v1149_v13 }
0x28b0   :  { %v921_v18 = vadd.f32 %v920_v17, %v1151_v16 }
0x28b2   :  { %1057 = vtanh.f32 %v921_v18 }
0x28b8   :  { %v1058_v19 = vpop.eup %1057 }
0x28b9   :  { %924 = vrot.lane.b32.xlu1 %v1058_v19, %s1068_s30 }
0x292b   :  { %v925_v57 = vpop.permute.xlu1 %924 }
0x292c   :  { %v927_v20 = vmul.f32 %v925_v57, %v877_v56 }
0x292e   :  { %929 = vrot.lane.b32.xlu1 %v927_v20, %s1069_s4 }
0x29a0   :  { %v930_v21 = vpop.permute.xlu1 %929 }
0x29a1   :  { %961 = vst.msk [vmem:[%s1401_s3 + $0x38] sm:$0xff] %vm18_vm0, %v930_v21 }
0x29a2   :  { %934 = vst.msk [vmem:[#allocation2] sm:$0xff] %vm18_vm0, %v930_v21 }

</bundles_post_ra>
